<compile_context>
chip_gen: v7x
topology: tpu7x:2x2x1
jax: 0.10.0
libtpu: 0.0.40
codegen_flags: <defaults>
</compile_context>

<pallas_src>
import functools

import numpy as np
import jax
import jax.numpy as jnp
from jax.experimental import pallas as pl
from jax.experimental.pallas import tpu as pltpu

PAD = 0
NEG_INF = -1e9
MATMUL_DTYPE = jnp.bfloat16      # MXU input dtype; accumulation is always f32.
VMEM_LIMIT = 32 * 1024 * 1024    # safe scoped-VMEM budget on v5e/v6e/v7x


def _round_up(x, m):
    return ((x + m - 1) // m) * m


def _row_tiles(n_rows, target=256):
    """Pick a row-tile size (multiple of 8) and the padded row count it divides."""
    if n_rows <= target:
        t = _round_up(max(n_rows, 8), 8)
        return t, t
    return _round_up(n_rows, target), target


def _mm(a, b):
    """bf16-input MXU matmul with f32 accumulation."""
    return jnp.dot(a.astype(MATMUL_DTYPE), b.astype(MATMUL_DTYPE),
                   preferred_element_type=jnp.float32)


def _layernorm(x, g, b, eps):
    x = x.astype(jnp.float32)
    mu = jnp.mean(x, axis=-1, keepdims=True)
    var = jnp.mean(jnp.square(x - mu), axis=-1, keepdims=True)
    return (x - mu) * jax.lax.rsqrt(var + eps) * g + b


# ---------------------------------------------------------------------------
# Kernel 1: fused multi-head-attention sub-block (grid = (batch, q row-blocks))
#   QKV projection -> masked softmax attention -> single full-depth Wo matmul
#   -> residual LayerNorm -> non-pad mask.  Masks built in-kernel.
# ---------------------------------------------------------------------------
def _mha_block_kernel(*refs, H, dk, dv, TQ, Lk, inv_temp, eps, causal, return_attn):
    (x_ref, kv_ref, keypad_ref, npad_ref,
     wq_ref, bq_ref, wkv_ref, bkv_ref,
     wo_ref, bo_ref, g_ref, b_ref, o_ref, *rest) = refs
    attn_ref = rest[0] if return_attn else None

    hk, hv = H * dk, H * dv
    dm = x_ref.shape[-1]

    x = x_ref[...].reshape(TQ, dm)            # (TQ, Dm)  f32 residual / query rows
    kv_src = kv_ref[...].reshape(Lk, dm)      # (Lk, Dm)  full (padded) key rows

    # Fused projections (bf16 MXU inputs, f32 accumulation).
    q_all = (_mm(x, wq_ref[...]) + bq_ref[...]).astype(MATMUL_DTYPE)    # (TQ, hk)
    kv_all = _mm(kv_src, wkv_ref[...]) + bkv_ref[...]                   # (Lk, hk+hv)
    k_all = kv_all[:, :hk].astype(MATMUL_DTYPE)
    v_all = kv_all[:, hk:hk + hv].astype(MATMUL_DTYPE)

    # Mask rebuilt in-kernel: tiny (1, Lk) key-pad row (+ iota causal mask).
    keypad = keypad_ref[...].reshape(1, Lk) > 0.5
    if causal:
        q0 = pl.program_id(1) * TQ
        row = jax.lax.broadcasted_iota(jnp.int32, (TQ, Lk), 0) + q0
        col = jax.lax.broadcasted_iota(jnp.int32, (TQ, Lk), 1)
        masked = jnp.logical_or(keypad, col > row)
    else:
        masked = jnp.broadcast_to(keypad, (TQ, Lk))

    # TODO(synk): for production d_k >= 128, move heads onto a grid axis with
    # (H, Dm, dk) weight blocks so head selection is not a lane-offset slice.
    head_outs = []
    for h in range(H):                                     # static unroll, H small
        qh = q_all[:, h * dk:(h + 1) * dk]
        kh = k_all[:, h * dk:(h + 1) * dk]
        vh = v_all[:, h * dv:(h + 1) * dv]
        # q . k^T without materializing a transpose (NT contraction on the MXU)
        s = jax.lax.dot_general(qh, kh, (((1,), (1,)), ((), ())),
                                preferred_element_type=jnp.float32) * inv_temp
        s = jnp.where(masked, NEG_INF, s)                  # masked_fill(-inf) analogue
        s = s - jnp.max(s, axis=-1, keepdims=True)
        e = jnp.exp(s)                                     # f32 softmax (v5e-friendly)
        p = e * pl.reciprocal(jnp.sum(e, axis=-1, keepdims=True), approx=True)
        if return_attn:
            attn_ref[h, 0] = p.astype(jnp.bfloat16)        # lane-dense bf16 writeback
        head_outs.append(jnp.dot(p.astype(MATMUL_DTYPE), vh,
                                 preferred_element_type=jnp.float32))

    heads = jnp.concatenate(head_outs, axis=-1)            # (TQ, H*dv)
    out = _mm(heads, wo_ref[...]) + bo_ref[...]            # ONE full-depth Wo matmul
    out = _layernorm(out + x, g_ref[...], b_ref[...], eps)
    o_ref[...] = (out * npad_ref[...].reshape(TQ, 1)).reshape(o_ref.shape)


def pallas_mha_block(p, q_src, kv_src, keypad, q_nonpad, *, n_head, d_k, d_v,
                     causal, return_attn, eps=1e-5, tq=256):
    B, Lq, Dm = q_src.shape
    _, Lk, _ = kv_src.shape
    Lqp, TQ = _row_tiles(Lq, tq)              # query rows tiled (sublane aligned)
    Lkp = _round_up(Lk, 128)                  # key/lane axis padded to 128

    q_p = jnp.pad(q_src, ((0, 0), (0, Lqp - Lq), (0, 0)))
    kv_p = jnp.pad(kv_src, ((0, 0), (0, Lkp - Lk), (0, 0)))
    keypad_p = jnp.pad(keypad.astype(jnp.float32), ((0, 0), (0, Lkp - Lk)),
                       constant_values=1.0).reshape(B, 1, Lkp)   # padded keys masked
    npad_p = jnp.pad(q_nonpad.astype(jnp.float32),
                     ((0, 0), (0, Lqp - Lq)))[..., None]          # (B, Lqp, 1)

    hk, hv = n_head * d_k, n_head * d_v
    n_qb = Lqp // TQ

    kernel = functools.partial(
        _mha_block_kernel, H=n_head, dk=d_k, dv=d_v, TQ=TQ, Lk=Lkp,
        inv_temp=float(1.0 / np.sqrt(d_k)), eps=eps, causal=causal,
        return_attn=return_attn)

    const = lambda b, i: (0, 0)
    in_specs = [
        pl.BlockSpec((1, TQ, Dm), lambda b, i: (b, i, 0)),     # query row block
        pl.BlockSpec((1, Lkp, Dm), lambda b, i: (b, 0, 0)),    # full key rows (per batch)
        pl.BlockSpec((1, 1, Lkp), lambda b, i: (b, 0, 0)),     # per-key pad vector
        pl.BlockSpec((1, TQ, 1), lambda b, i: (b, i, 0)),      # query non-pad vector
        pl.BlockSpec((Dm, hk), const),                         # Wq (bf16)
        pl.BlockSpec((1, hk), const),
        pl.BlockSpec((Dm, hk + hv), const),                    # [Wk | Wv] packed (bf16)
        pl.BlockSpec((1, hk + hv), const),
        pl.BlockSpec((hv, Dm), const),                         # Wo (bf16)
        pl.BlockSpec((1, Dm), const),
        pl.BlockSpec((1, Dm), const),
        pl.BlockSpec((1, Dm), const),
    ]
    out_specs = [pl.BlockSpec((1, TQ, Dm), lambda b, i: (b, i, 0))]
    out_shape = [jax.ShapeDtypeStruct((B, Lqp, Dm), jnp.float32)]
    if return_attn:
        out_specs.append(
            pl.BlockSpec((n_head, 1, TQ, Lkp), lambda b, i: (0, b, i, 0)))
        out_shape.append(
            jax.ShapeDtypeStruct((n_head, B, Lqp, Lkp), jnp.bfloat16))

    outs = pl.pallas_call(
        kernel,
        grid=(B, n_qb),
        in_specs=in_specs,
        out_specs=out_specs,
        out_shape=out_shape,
        compiler_params=pltpu.CompilerParams(
            dimension_semantics=("parallel", "parallel"),
            vmem_limit_bytes=VMEM_LIMIT),
    )(q_p, kv_p, keypad_p, npad_p,
      p["wq"], p["bq"].reshape(1, hk),
      p["wkv"], p["bkv"].reshape(1, hk + hv),
      p["wo"], p["bo"].reshape(1, Dm),
      p["ln_g"].reshape(1, Dm), p["ln_b"].reshape(1, Dm))

    out = outs[0][:, :Lq, :]
    attn = None
    if return_attn:
        # head-major ordering matches torch's permute(2,0,1,3).view(n_head*B, ...)
        attn = outs[1][:, :, :Lq, :Lk].astype(jnp.float32).reshape(n_head * B, Lq, Lk)
    return out, attn


# ---------------------------------------------------------------------------
# Kernel 2: fused position-wise FFN sub-block (grid = row blocks)
# ---------------------------------------------------------------------------
def _ffn_block_kernel(x_ref, npad_ref, w1_ref, b1_ref, w2_ref, b2_ref,
                      g_ref, b_ref, o_ref, *, eps):
    x = x_ref[...]
    h = jnp.maximum(_mm(x, w1_ref[...]) + b1_ref[...], 0.0)     # fused bias + ReLU
    y = _mm(h, w2_ref[...]) + b2_ref[...]
    y = _layernorm(y + x, g_ref[...], b_ref[...], eps)          # fused residual LN
    o_ref[...] = y * npad_ref[...]                              # fused non-pad mask


def pallas_ffn_block(p, x, q_nonpad, eps=1e-5, tr=256):
    B, L, Dm = x.shape
    Di = p["w1"].shape[1]
    R = B * L
    Rp, TR = _row_tiles(R, tr)
    x2 = jnp.pad(x.reshape(R, Dm), ((0, Rp - R), (0, 0)))
    np2 = jnp.pad(q_nonpad.reshape(R, 1), ((0, Rp - R), (0, 0)))
    const = lambda i: (0, 0)
    out = pl.pallas_call(
        functools.partial(_ffn_block_kernel, eps=eps),
        grid=(Rp // TR,),
        in_specs=[
            pl.BlockSpec((TR, Dm), lambda i: (i, 0)),
            pl.BlockSpec((TR, 1), lambda i: (i, 0)),
            pl.BlockSpec((Dm, Di), const),
            pl.BlockSpec((1, Di), const),
            pl.BlockSpec((Di, Dm), const),
            pl.BlockSpec((1, Dm), const),
            pl.BlockSpec((1, Dm), const),
            pl.BlockSpec((1, Dm), const),
        ],
        out_specs=pl.BlockSpec((TR, Dm), lambda i: (i, 0)),
        out_shape=jax.ShapeDtypeStruct((Rp, Dm), jnp.float32),
        compiler_params=pltpu.CompilerParams(
            dimension_semantics=("parallel",),
            vmem_limit_bytes=VMEM_LIMIT),
    )(x2, np2, p["w1"], p["b1"].reshape(1, Di), p["w2"], p["b2"].reshape(1, Dm),
      p["ln_g"].reshape(1, Dm), p["ln_b"].reshape(1, Dm))
    return out[:R].reshape(B, L, Dm)


# ---------------------------------------------------------------------------
# Kernel 3: BERT embedding LayerNorm (residual-free) + sinusoid position add
# ---------------------------------------------------------------------------
def _embed_ln_kernel(x_ref, pos_ref, g_ref, b_ref, o_ref, *, eps):
    o_ref[...] = _layernorm(x_ref[...], g_ref[...], b_ref[...], eps) + pos_ref[...]


def pallas_embed_ln(x2d, pos2d, gamma, beta, eps=1e-12, tr=256):
    R, D = x2d.shape
    Rp, TR = _row_tiles(R, tr)
    xp = jnp.pad(x2d, ((0, Rp - R), (0, 0)))
    pp = jnp.pad(pos2d, ((0, Rp - R), (0, 0)))
    const = lambda i: (0, 0)
    out = pl.pallas_call(
        functools.partial(_embed_ln_kernel, eps=eps),
        grid=(Rp // TR,),
        in_specs=[pl.BlockSpec((TR, D), lambda i: (i, 0)),
                  pl.BlockSpec((TR, D), lambda i: (i, 0)),
                  pl.BlockSpec((1, D), const),
                  pl.BlockSpec((1, D), const)],
        out_specs=pl.BlockSpec((TR, D), lambda i: (i, 0)),
        out_shape=jax.ShapeDtypeStruct((Rp, D), jnp.float32),
        compiler_params=pltpu.CompilerParams(
            dimension_semantics=("parallel",),
            vmem_limit_bytes=VMEM_LIMIT),
    )(xp, pp, gamma.reshape(1, D), beta.reshape(1, D))
    return out[:R]


# ---------------------------------------------------------------------------
# Kernel 4: tiled final vocab projection.
#   Grid (N_blocks, M_blocks, K_blocks): N outermost so the big (K, vocab)
#   weight column is streamed once per N block; f32 VMEM accumulator over K.
# ---------------------------------------------------------------------------
def _linear_acc_kernel(x_ref, w_ref, b_ref, o_ref, acc_ref):
    @pl.when(pl.program_id(2) == 0)
    def _():
        acc_ref[...] = jnp.zeros_like(acc_ref)
    acc_ref[...] += _mm(x_ref[...], w_ref[...])

    @pl.when(pl.program_id(2) == pl.num_programs(2) - 1)
    def _():
        o_ref[...] = acc_ref[...] + b_ref[...]


def pallas_linear_tiled(x2d, w, b, *, tm=512, tn=512, tk=1024):
    M, K = x2d.shape
    N = w.shape[1]
    Mp, tm = _row_tiles(M, tm)
    Np = _round_up(N, 128)
    tn = min(tn, Np)
    Np = _round_up(Np, tn)
    if K <= tk:                 # common case: K untiled -> weight read once per N block
        Kp = _round_up(K, 8)
        tk = Kp
    else:                       # huge d_model: tile K (keeps tiles within v7x VMEM)
        tk = _round_up(tk, 128)
        Kp = _round_up(K, tk)

    xp = jnp.pad(x2d, ((0, Mp - M), (0, Kp - K)))
    wp = jnp.pad(w, ((0, Kp - K), (0, Np - N)))                 # stays bf16
    bp = jnp.pad(b, (0, Np - N)).reshape(1, Np).astype(jnp.float32)

    out = pl.pallas_call(
        _linear_acc_kernel,
        grid=(Np // tn, Mp // tm, Kp // tk),
        in_specs=[
            pl.BlockSpec((tm, tk), lambda j, i, k: (i, k)),
            pl.BlockSpec((tk, tn), lambda j, i, k: (k, j)),
            pl.BlockSpec((1, tn), lambda j, i, k: (0, j)),
        ],
        out_specs=pl.BlockSpec((tm, tn), lambda j, i, k: (i, j)),
        out_shape=jax.ShapeDtypeStruct((Mp, Np), jnp.float32),
        scratch_shapes=[pltpu.VMEM((tm, tn), jnp.float32)],
        compiler_params=pltpu.CompilerParams(
            dimension_semantics=("parallel", "parallel", "arbitrary"),
            vmem_limit_bytes=VMEM_LIMIT),
    )(xp, wp, bp)
    return out[:M, :N]


# ---------------------------------------------------------------------------
# Model building blocks
# ---------------------------------------------------------------------------
def decoder_layer(p, dec_input, enc_output, q_nonpad, tgt_keypad, src_keypad,
                  *, n_head, d_k, d_v):
    # self-attention probs are discarded by the reference forward -> never written
    out, _ = pallas_mha_block(p["slf_attn"], dec_input, dec_input, tgt_keypad,
                              q_nonpad, n_head=n_head, d_k=d_k, d_v=d_v,
                              causal=True, return_attn=False)
    out, enc_attn = pallas_mha_block(p["enc_attn"], out, enc_output, src_keypad,
                                     q_nonpad, n_head=n_head, d_k=d_k, d_v=d_v,
                                     causal=False, return_attn=True)
    out = pallas_ffn_block(p["ffn"], out, q_nonpad)
    return out, enc_attn


def get_sinusoid_encoding_table(n_position, d_hid, padding_idx=None):
    pos = np.arange(n_position)[:, None].astype(np.float64)
    j = np.arange(d_hid)[None, :]
    table = pos / np.power(10000, 2 * (j // 2) / d_hid)
    table[:, 0::2] = np.sin(table[:, 0::2])
    table[:, 1::2] = np.cos(table[:, 1::2])
    if padding_idx is not None:
        table[padding_idx] = 0.0
    return jnp.asarray(table, dtype=jnp.float32)


def bert_decoder_forward(params, src_seq, enc_output, tgt_seq, *, n_head, d_k, d_v):
    B, Lt = tgt_seq.shape
    _, Ls = src_seq.shape
    Dm = enc_output.shape[-1]
    Lt8 = _round_up(Lt, 8)

    # --- tiny per-position pad vectors; full attention masks rebuilt in-kernel ---
    tgt_is_pad = (tgt_seq == PAD)
    q_nonpad = jnp.pad((~tgt_is_pad).astype(jnp.float32), ((0, 0), (0, Lt8 - Lt)))
    tgt_keypad = jnp.pad(tgt_is_pad.astype(jnp.float32), ((0, 0), (0, Lt8 - Lt)),
                         constant_values=1.0)
    src_keypad = (src_seq == PAD).astype(jnp.float32)

    # --- embeddings (gathers stay in plain JAX) ---
    # BertEmbeddings: word + position + token_type(=0), then LayerNorm (eps=1e-12).
    emb = params["emb"]
    word = jnp.take(emb["word"], tgt_seq, axis=0)                        # (B,Lt,Dm)
    bert_pos = jnp.take(emb["pos"], jnp.arange(Lt), axis=0)[None]        # (1,Lt,Dm)
    tok_type = emb["tok_type"][0][None, None]                            # (1,1,Dm)
    seq_sum = (word + bert_pos + tok_type).reshape(B * Lt, Dm)

    # BertPositionEmbedding: frozen sinusoid table, positions 1..Lt
    tgt_pos = jnp.tile(jnp.arange(1, Lt + 1)[None], (B, 1))
    pos_emb = jnp.take(params["sinusoid"], tgt_pos, axis=0).reshape(B * Lt, Dm)

    dec_out = pallas_embed_ln(seq_sum, pos_emb, emb["ln_g"], emb["ln_b"],
                              eps=1e-12).reshape(B, Lt, Dm)
    dec_out = jnp.pad(dec_out, ((0, 0), (0, Lt8 - Lt), (0, 0)))

    dec_enc_attn_list = []
    for layer_p in params["layers"]:
        dec_out, enc_attn = decoder_layer(
            layer_p, dec_out, enc_output, q_nonpad, tgt_keypad, src_keypad,
            n_head=n_head, d_k=d_k, d_v=d_v)
        dec_enc_attn_list.append(enc_attn[:, :Lt, :])

    logits = pallas_linear_tiled(dec_out.reshape(B * Lt8, Dm),
                                 params["last_w"], params["last_b"])
    vocab = params["last_w"].shape[1]
    logits = logits.reshape(B, Lt8, vocab)[:, :Lt, :]
    return logits, dec_enc_attn_list


# ---------------------------------------------------------------------------
# Deterministic parameter initialization (matmul weights stored in bf16)
# ---------------------------------------------------------------------------
class _KeyGen:
    def __init__(self, key):
        self.key = key

    def __call__(self):
        self.key, sub = jax.random.split(self.key)
        return sub


def _dense(kg, fan_in, fan_out, std=0.02):
    w = (jax.random.normal(kg(), (fan_in, fan_out), jnp.float32) * std)
    return w.astype(jnp.bfloat16), jnp.zeros((fan_out,), jnp.float32)


def _mha_params(kg, d_model, n_head, d_k, d_v):
    wq, bq = _dense(kg, d_model, n_head * d_k)
    wk, bk = _dense(kg, d_model, n_head * d_k)
    wv, bv = _dense(kg, d_model, n_head * d_v)
    wo, bo = _dense(kg, n_head * d_v, d_model)
    return dict(
        wq=wq, bq=bq,
        # packed [Wk | Wv] so the key/value projection is one matmul
        wkv=jnp.concatenate([wk, wv], axis=1),
        bkv=jnp.concatenate([bk, bv], axis=0),
        wo=wo, bo=bo,
        ln_g=jnp.ones((d_model,), jnp.float32),
        ln_b=jnp.zeros((d_model,), jnp.float32))


def init_params(key, *, vocab_size, d_model, d_inner, n_head, d_k, d_v,
                n_layers, max_tgt_seq_len, max_bert_pos):
    kg = _KeyGen(key)
    emb = dict(
        word=jax.random.normal(kg(), (vocab_size, d_model), jnp.float32) * 0.02,
        pos=jax.random.normal(kg(), (max_bert_pos, d_model), jnp.float32) * 0.02,
        tok_type=jax.random.normal(kg(), (2, d_model), jnp.float32) * 0.02,
        ln_g=jnp.ones((d_model,), jnp.float32),
        ln_b=jnp.zeros((d_model,), jnp.float32),
    )
    layers = []
    for _ in range(n_layers):
        w1, b1 = _dense(kg, d_model, d_inner)
        w2, b2 = _dense(kg, d_inner, d_model)
        layers.append(dict(
            slf_attn=_mha_params(kg, d_model, n_head, d_k, d_v),
            enc_attn=_mha_params(kg, d_model, n_head, d_k, d_v),
            ffn=dict(w1=w1, b1=b1, w2=w2, b2=b2,
                     ln_g=jnp.ones((d_model,), jnp.float32),
                     ln_b=jnp.zeros((d_model,), jnp.float32)),
        ))
    last_w, last_b = _dense(kg, d_model, vocab_size)
    return dict(
        emb=emb,
        sinusoid=get_sinusoid_encoding_table(max_tgt_seq_len + 1, d_model,
                                             padding_idx=0),
        layers=layers,
        last_w=last_w,
        last_b=last_b,
    )


# ---------------------------------------------------------------------------
if __name__ == "__main__":
    # small config consistent with the module's __init__
    vocab_size = 40
    d_model = 32
    d_inner = 64
    n_head = 2
    d_k = 16
    d_v = 16
    n_layers = 2
    max_tgt_seq_len = 16   # Constants.MAX_TGT_SEQ_LEN
    max_bert_pos = 64

    B, Ls, Lt = 2, 10, 8

    key = jax.random.PRNGKey(0)
    kp, k1, k2, k3 = jax.random.split(key, 4)

    params = init_params(kp, vocab_size=vocab_size, d_model=d_model, d_inner=d_inner,
                         n_head=n_head, d_k=d_k, d_v=d_v, n_layers=n_layers,
                         max_tgt_seq_len=max_tgt_seq_len, max_bert_pos=max_bert_pos)

    src_seq = jax.random.randint(k1, (B, Ls), 1, vocab_size, dtype=jnp.int32)
    src_seq = src_seq.at[0, -2:].set(PAD)          # some padding in the source
    tgt_seq = jax.random.randint(k2, (B, Lt), 1, vocab_size, dtype=jnp.int32)
    enc_output = jax.random.normal(k3, (B, Ls, d_model), jnp.float32)

    forward = jax.jit(functools.partial(bert_decoder_forward,
                                        n_head=n_head, d_k=d_k, d_v=d_v))
    logits, dec_enc_attn_list = forward(params, src_seq, enc_output, tgt_seq)

    jax.block_until_ready(logits)
    for a in dec_enc_attn_list:
        jax.block_until_ready(a)

    assert logits.shape == (B, Lt, vocab_size)
    assert len(dec_enc_attn_list) == n_layers
    assert dec_enc_attn_list[0].shape == (n_head * B, Lt, Ls)
    assert bool(jnp.all(jnp.isfinite(logits)))
    for a in dec_enc_attn_list:
        assert bool(jnp.all(jnp.isfinite(a)))

    print("KERNEL_OK")
</pallas_src>

<mosaic_0001>
module attributes {stable_mosaic.version = 11 : i64} {
  func.func @_embed_ln_kernel(%arg0: i32, %arg1: memref<16x32xf32, #tpu.memory_space<vmem>>, %arg2: memref<16x32xf32, #tpu.memory_space<vmem>>, %arg3: memref<1x32xf32, #tpu.memory_space<vmem>>, %arg4: memref<1x32xf32, #tpu.memory_space<vmem>>, %arg5: memref<16x32xf32, #tpu.memory_space<vmem>>) attributes {dimension_semantics = [#tpu.dimension_semantics<parallel>], iteration_bounds = array<i64: 1>, scalar_prefetch = 0 : i64, scratch_operands = 0 : i64, tpu.core_type = #tpu.core_type<tc>, window_params = [{transform_indices = @transform_0, window_bounds = array<i64: 16, 32>}, {transform_indices = @transform_1, window_bounds = array<i64: 16, 32>}, {pipeline_mode = #tpu.pipeline_mode<synchronous>, transform_indices = @transform_2, window_bounds = array<i64: 1, 32>}, {pipeline_mode = #tpu.pipeline_mode<synchronous>, transform_indices = @transform_3, window_bounds = array<i64: 1, 32>}, {transform_indices = @transform_4, window_bounds = array<i64: 16, 32>}]} {
    %c0 = arith.constant 0 : index
    %c0_0 = arith.constant 0 : index
    %0 = vector.load %arg1[%c0, %c0_0] : memref<16x32xf32, #tpu.memory_space<vmem>>, vector<16x32xf32>
    %c0_1 = arith.constant 0 : index
    %c0_2 = arith.constant 0 : index
    %1 = vector.load %arg3[%c0_1, %c0_2] : memref<1x32xf32, #tpu.memory_space<vmem>>, vector<1x32xf32>
    %c0_3 = arith.constant 0 : index
    %c0_4 = arith.constant 0 : index
    %2 = vector.load %arg4[%c0_3, %c0_4] : memref<1x32xf32, #tpu.memory_space<vmem>>, vector<1x32xf32>
    %cst = arith.constant dense<0.000000e+00> : vector<16xf32>
    %3 = vector.multi_reduction <add>, %0, %cst [1] : vector<16x32xf32> to vector<16xf32>
    %4 = vector.shape_cast %3 : vector<16xf32> to vector<16x1xf32>
    %cst_5 = arith.constant 3.200000e+01 : f32
    %5 = vector.broadcast %cst_5 : f32 to vector<16x1xf32>
    %6 = arith.divf %4, %5 : vector<16x1xf32>
    %7 = vector.broadcast %6 : vector<16x1xf32> to vector<16x32xf32>
    %8 = arith.subf %0, %7 : vector<16x32xf32>
    %9 = arith.mulf %8, %8 : vector<16x32xf32>
    %cst_6 = arith.constant dense<0.000000e+00> : vector<16xf32>
    %10 = vector.multi_reduction <add>, %9, %cst_6 [1] : vector<16x32xf32> to vector<16xf32>
    %11 = vector.shape_cast %10 : vector<16xf32> to vector<16x1xf32>
    %cst_7 = arith.constant 3.200000e+01 : f32
    %12 = vector.broadcast %cst_7 : f32 to vector<16x1xf32>
    %13 = arith.divf %11, %12 : vector<16x1xf32>
    %14 = vector.broadcast %6 : vector<16x1xf32> to vector<16x32xf32>
    %15 = arith.subf %0, %14 : vector<16x32xf32>
    %cst_8 = arith.constant 9.99999996E-13 : f32
    %16 = vector.broadcast %cst_8 : f32 to vector<16x1xf32>
    %17 = arith.addf %13, %16 : vector<16x1xf32>
    %18 = math.rsqrt %17 : vector<16x1xf32>
    %19 = vector.broadcast %18 : vector<16x1xf32> to vector<16x32xf32>
    %20 = arith.mulf %15, %19 : vector<16x32xf32>
    %21 = vector.broadcast %1 : vector<1x32xf32> to vector<16x32xf32>
    %22 = arith.mulf %20, %21 : vector<16x32xf32>
    %23 = vector.broadcast %2 : vector<1x32xf32> to vector<16x32xf32>
    %24 = arith.addf %22, %23 : vector<16x32xf32>
    %c0_9 = arith.constant 0 : index
    %c0_10 = arith.constant 0 : index
    %25 = vector.load %arg2[%c0_9, %c0_10] : memref<16x32xf32, #tpu.memory_space<vmem>>, vector<16x32xf32>
    %26 = arith.addf %24, %25 : vector<16x32xf32>
    %c0_11 = arith.constant 0 : index
    %c0_12 = arith.constant 0 : index
    %27 = vector.load %arg5[%c0_11, %c0_12] : memref<16x32xf32, #tpu.memory_space<vmem>>, vector<16x32xf32>
    tpu.vector_store %arg5[%c0_11, %c0_12], %26 {strides = array<i32>} : memref<16x32xf32, #tpu.memory_space<vmem>>, vector<16x32xf32>,
    return
  }
  func.func @transform_0(%arg0: i32) -> (i32, i32) {
    %c0_i32 = arith.constant 0 : i32
    %c0_i32_0 = arith.constant 0 : i32
    return %arg0, %c0_i32 : i32, i32
  }
  func.func @transform_1(%arg0: i32) -> (i32, i32) {
    %c0_i32 = arith.constant 0 : i32
    %c0_i32_0 = arith.constant 0 : i32
    return %arg0, %c0_i32 : i32, i32
  }
  func.func @transform_2(%arg0: i32) -> (i32, i32) {
    %c0_i32 = arith.constant 0 : i32
    %c0_i32_0 = arith.constant 0 : i32
    %c0_i32_1 = arith.constant 0 : i32
    return %c0_i32, %c0_i32_0 : i32, i32
  }
  func.func @transform_3(%arg0: i32) -> (i32, i32) {
    %c0_i32 = arith.constant 0 : i32
    %c0_i32_0 = arith.constant 0 : i32
    %c0_i32_1 = arith.constant 0 : i32
    return %c0_i32, %c0_i32_0 : i32, i32
  }
  func.func @transform_4(%arg0: i32) -> (i32, i32) {
    %c0_i32 = arith.constant 0 : i32
    %c0_i32_0 = arith.constant 0 : i32
    return %arg0, %c0_i32 : i32, i32
  }
}

module attributes {stable_mosaic.version = 11 : i64} {
  func.func @_ffn_block_kernel(%arg0: i32, %arg1: memref<16x32xf32, #tpu.memory_space<vmem>>, %arg2: memref<16x1xf32, #tpu.memory_space<vmem>>, %arg3: memref<32x64xbf16, #tpu.memory_space<vmem>>, %arg4: memref<1x64xf32, #tpu.memory_space<vmem>>, %arg5: memref<64x32xbf16, #tpu.memory_space<vmem>>, %arg6: memref<1x32xf32, #tpu.memory_space<vmem>>, %arg7: memref<1x32xf32, #tpu.memory_space<vmem>>, %arg8: memref<1x32xf32, #tpu.memory_space<vmem>>, %arg9: memref<16x32xf32, #tpu.memory_space<vmem>>) attributes {dimension_semantics = [#tpu.dimension_semantics<parallel>], iteration_bounds = array<i64: 1>, scalar_prefetch = 0 : i64, scratch_operands = 0 : i64, tpu.core_type = #tpu.core_type<tc>, window_params = [{transform_indices = @transform_0, window_bounds = array<i64: 16, 32>}, {transform_indices = @transform_1, window_bounds = array<i64: 16, 1>}, {pipeline_mode = #tpu.pipeline_mode<synchronous>, transform_indices = @transform_2, window_bounds = array<i64: 32, 64>}, {pipeline_mode = #tpu.pipeline_mode<synchronous>, transform_indices = @transform_3, window_bounds = array<i64: 1, 64>}, {pipeline_mode = #tpu.pipeline_mode<synchronous>, transform_indices = @transform_4, window_bounds = array<i64: 64, 32>}, {pipeline_mode = #tpu.pipeline_mode<synchronous>, transform_indices = @transform_5, window_bounds = array<i64: 1, 32>}, {pipeline_mode = #tpu.pipeline_mode<synchronous>, transform_indices = @transform_6, window_bounds = array<i64: 1, 32>}, {pipeline_mode = #tpu.pipeline_mode<synchronous>, transform_indices = @transform_7, window_bounds = array<i64: 1, 32>}, {transform_indices = @transform_8, window_bounds = array<i64: 16, 32>}]} {
    %c0 = arith.constant 0 : index
    %c0_0 = arith.constant 0 : index
    %0 = vector.load %arg1[%c0, %c0_0] : memref<16x32xf32, #tpu.memory_space<vmem>>, vector<16x32xf32>
    %c0_1 = arith.constant 0 : index
    %c0_2 = arith.constant 0 : index
    %1 = vector.load %arg3[%c0_1, %c0_2] : memref<32x64xbf16, #tpu.memory_space<vmem>>, vector<32x64xbf16>
    %2 = arith.truncf %0 : vector<16x32xf32> to vector<16x32xbf16>
    %cst = arith.constant dense<0.000000e+00> : vector<16x64xf32>
    %3 = tpu.matmul %2, %1, %cst {dimension_numbers = #tpu.dot_dimension_numbers<[1], [0], [0], [1], [0, 0, 1, 1], [], []>} : vector<16x32xbf16>, vector<32x64xbf16>, vector<16x64xf32> -> vector<16x64xf32>
    %c0_3 = arith.constant 0 : index
    %c0_4 = arith.constant 0 : index
    %4 = vector.load %arg4[%c0_3, %c0_4] : memref<1x64xf32, #tpu.memory_space<vmem>>, vector<1x64xf32>
    %5 = vector.broadcast %4 : vector<1x64xf32> to vector<16x64xf32>
    %6 = arith.addf %3, %5 : vector<16x64xf32>
    %cst_5 = arith.constant 0.000000e+00 : f32
    %7 = vector.broadcast %cst_5 : f32 to vector<16x64xf32>
    %8 = arith.maximumf %6, %7 : vector<16x64xf32>
    %c0_6 = arith.constant 0 : index
    %c0_7 = arith.constant 0 : index
    %9 = vector.load %arg5[%c0_6, %c0_7] : memref<64x32xbf16, #tpu.memory_space<vmem>>, vector<64x32xbf16>
    %10 = arith.truncf %8 : vector<16x64xf32> to vector<16x64xbf16>
    %cst_8 = arith.constant dense<0.000000e+00> : vector<16x32xf32>
    %11 = tpu.matmul %10, %9, %cst_8 {dimension_numbers = #tpu.dot_dimension_numbers<[1], [0], [0], [1], [0, 0, 1, 1], [], []>} : vector<16x64xbf16>, vector<64x32xbf16>, vector<16x32xf32> -> vector<16x32xf32>
    %c0_9 = arith.constant 0 : index
    %c0_10 = arith.constant 0 : index
    %12 = vector.load %arg6[%c0_9, %c0_10] : memref<1x32xf32, #tpu.memory_space<vmem>>, vector<1x32xf32>
    %13 = vector.broadcast %12 : vector<1x32xf32> to vector<16x32xf32>
    %14 = arith.addf %11, %13 : vector<16x32xf32>
    %15 = arith.addf %14, %0 : vector<16x32xf32>
    %c0_11 = arith.constant 0 : index
    %c0_12 = arith.constant 0 : index
    %16 = vector.load %arg7[%c0_11, %c0_12] : memref<1x32xf32, #tpu.memory_space<vmem>>, vector<1x32xf32>
    %c0_13 = arith.constant 0 : index
    %c0_14 = arith.constant 0 : index
    %17 = vector.load %arg8[%c0_13, %c0_14] : memref<1x32xf32, #tpu.memory_space<vmem>>, vector<1x32xf32>
    %cst_15 = arith.constant dense<0.000000e+00> : vector<16xf32>
    %18 = vector.multi_reduction <add>, %15, %cst_15 [1] : vector<16x32xf32> to vector<16xf32>
    %19 = vector.shape_cast %18 : vector<16xf32> to vector<16x1xf32>
    %cst_16 = arith.constant 3.200000e+01 : f32
    %20 = vector.broadcast %cst_16 : f32 to vector<16x1xf32>
    %21 = arith.divf %19, %20 : vector<16x1xf32>
    %22 = vector.broadcast %21 : vector<16x1xf32> to vector<16x32xf32>
    %23 = arith.subf %15, %22 : vector<16x32xf32>
    %24 = arith.mulf %23, %23 : vector<16x32xf32>
    %cst_17 = arith.constant dense<0.000000e+00> : vector<16xf32>
    %25 = vector.multi_reduction <add>, %24, %cst_17 [1] : vector<16x32xf32> to vector<16xf32>
    %26 = vector.shape_cast %25 : vector<16xf32> to vector<16x1xf32>
    %cst_18 = arith.constant 3.200000e+01 : f32
    %27 = vector.broadcast %cst_18 : f32 to vector<16x1xf32>
    %28 = arith.divf %26, %27 : vector<16x1xf32>
    %29 = vector.broadcast %21 : vector<16x1xf32> to vector<16x32xf32>
    %30 = arith.subf %15, %29 : vector<16x32xf32>
    %cst_19 = arith.constant 9.99999974E-6 : f32
    %31 = vector.broadcast %cst_19 : f32 to vector<16x1xf32>
    %32 = arith.addf %28, %31 : vector<16x1xf32>
    %33 = math.rsqrt %32 : vector<16x1xf32>
    %34 = vector.broadcast %33 : vector<16x1xf32> to vector<16x32xf32>
    %35 = arith.mulf %30, %34 : vector<16x32xf32>
    %36 = vector.broadcast %16 : vector<1x32xf32> to vector<16x32xf32>
    %37 = arith.mulf %35, %36 : vector<16x32xf32>
    %38 = vector.broadcast %17 : vector<1x32xf32> to vector<16x32xf32>
    %39 = arith.addf %37, %38 : vector<16x32xf32>
    %c0_20 = arith.constant 0 : index
    %c0_21 = arith.constant 0 : index
    %40 = vector.load %arg2[%c0_20, %c0_21] : memref<16x1xf32, #tpu.memory_space<vmem>>, vector<16x1xf32>
    %41 = vector.broadcast %40 : vector<16x1xf32> to vector<16x32xf32>
    %42 = arith.mulf %39, %41 : vector<16x32xf32>
    %c0_22 = arith.constant 0 : index
    %c0_23 = arith.constant 0 : index
    %43 = vector.load %arg9[%c0_22, %c0_23] : memref<16x32xf32, #tpu.memory_space<vmem>>, vector<16x32xf32>
    tpu.vector_store %arg9[%c0_22, %c0_23], %42 {strides = array<i32>} : memref<16x32xf32, #tpu.memory_space<vmem>>, vector<16x32xf32>,
    return
  }
  func.func @transform_0(%arg0: i32) -> (i32, i32) {
    %c0_i32 = arith.constant 0 : i32
    %c0_i32_0 = arith.constant 0 : i32
    return %arg0, %c0_i32 : i32, i32
  }
  func.func @transform_1(%arg0: i32) -> (i32, i32) {
    %c0_i32 = arith.constant 0 : i32
    %c0_i32_0 = arith.constant 0 : i32
    return %arg0, %c0_i32 : i32, i32
  }
  func.func @transform_2(%arg0: i32) -> (i32, i32) {
    %c0_i32 = arith.constant 0 : i32
    %c0_i32_0 = arith.constant 0 : i32
    %c0_i32_1 = arith.constant 0 : i32
    return %c0_i32, %c0_i32_0 : i32, i32
  }
  func.func @transform_3(%arg0: i32) -> (i32, i32) {
    %c0_i32 = arith.constant 0 : i32
    %c0_i32_0 = arith.constant 0 : i32
    %c0_i32_1 = arith.constant 0 : i32
    return %c0_i32, %c0_i32_0 : i32, i32
  }
  func.func @transform_4(%arg0: i32) -> (i32, i32) {
    %c0_i32 = arith.constant 0 : i32
    %c0_i32_0 = arith.constant 0 : i32
    %c0_i32_1 = arith.constant 0 : i32
    return %c0_i32, %c0_i32_0 : i32, i32
  }
  func.func @transform_5(%arg0: i32) -> (i32, i32) {
    %c0_i32 = arith.constant 0 : i32
    %c0_i32_0 = arith.constant 0 : i32
    %c0_i32_1 = arith.constant 0 : i32
    return %c0_i32, %c0_i32_0 : i32, i32
  }
  func.func @transform_6(%arg0: i32) -> (i32, i32) {
    %c0_i32 = arith.constant 0 : i32
    %c0_i32_0 = arith.constant 0 : i32
    %c0_i32_1 = arith.constant 0 : i32
    return %c0_i32, %c0_i32_0 : i32, i32
  }
  func.func @transform_7(%arg0: i32) -> (i32, i32) {
    %c0_i32 = arith.constant 0 : i32
    %c0_i32_0 = arith.constant 0 : i32
    %c0_i32_1 = arith.constant 0 : i32
    return %c0_i32, %c0_i32_0 : i32, i32
  }
  func.func @transform_8(%arg0: i32) -> (i32, i32) {
    %c0_i32 = arith.constant 0 : i32
    %c0_i32_0 = arith.constant 0 : i32
    return %arg0, %c0_i32 : i32, i32
  }
}

module attributes {stable_mosaic.version = 11 : i64} {
  func.func @_mha_block_kernel(%arg0: i32, %arg1: i32, %arg2: memref<1x8x32xf32, #tpu.memory_space<vmem>>, %arg3: memref<1x128x32xf32, #tpu.memory_space<vmem>>, %arg4: memref<1x1x128xf32, #tpu.memory_space<vmem>>, %arg5: memref<1x8x1xf32, #tpu.memory_space<vmem>>, %arg6: memref<32x32xbf16, #tpu.memory_space<vmem>>, %arg7: memref<1x32xf32, #tpu.memory_space<vmem>>, %arg8: memref<32x64xbf16, #tpu.memory_space<vmem>>, %arg9: memref<1x64xf32, #tpu.memory_space<vmem>>, %arg10: memref<32x32xbf16, #tpu.memory_space<vmem>>, %arg11: memref<1x32xf32, #tpu.memory_space<vmem>>, %arg12: memref<1x32xf32, #tpu.memory_space<vmem>>, %arg13: memref<1x32xf32, #tpu.memory_space<vmem>>, %arg14: memref<1x8x32xf32, #tpu.memory_space<vmem>>) attributes {dimension_semantics = [#tpu.dimension_semantics<parallel>, #tpu.dimension_semantics<parallel>], iteration_bounds = array<i64: 2, 1>, scalar_prefetch = 0 : i64, scratch_operands = 0 : i64, tpu.core_type = #tpu.core_type<tc>, window_params = [{transform_indices = @transform_0, window_bounds = array<i64: 1, 8, 32>}, {transform_indices = @transform_1, window_bounds = array<i64: 1, 128, 32>}, {transform_indices = @transform_2, window_bounds = array<i64: 1, 1, 128>}, {transform_indices = @transform_3, window_bounds = array<i64: 1, 8, 1>}, {pipeline_mode = #tpu.pipeline_mode<synchronous>, transform_indices = @transform_4, window_bounds = array<i64: 32, 32>}, {pipeline_mode = #tpu.pipeline_mode<synchronous>, transform_indices = @transform_5, window_bounds = array<i64: 1, 32>}, {pipeline_mode = #tpu.pipeline_mode<synchronous>, transform_indices = @transform_6, window_bounds = array<i64: 32, 64>}, {pipeline_mode = #tpu.pipeline_mode<synchronous>, transform_indices = @transform_7, window_bounds = array<i64: 1, 64>}, {pipeline_mode = #tpu.pipeline_mode<synchronous>, transform_indices = @transform_8, window_bounds = array<i64: 32, 32>}, {pipeline_mode = #tpu.pipeline_mode<synchronous>, transform_indices = @transform_9, window_bounds = array<i64: 1, 32>}, {pipeline_mode = #tpu.pipeline_mode<synchronous>, transform_indices = @transform_10, window_bounds = array<i64: 1, 32>}, {pipeline_mode = #tpu.pipeline_mode<synchronous>, transform_indices = @transform_11, window_bounds = array<i64: 1, 32>}, {transform_indices = @transform_12, window_bounds = array<i64: 1, 8, 32>}]} {
    %c0 = arith.constant 0 : index
    %c0_0 = arith.constant 0 : index
    %c0_1 = arith.constant 0 : index
    %0 = vector.load %arg2[%c0, %c0_0, %c0_1] : memref<1x8x32xf32, #tpu.memory_space<vmem>>, vector<1x8x32xf32>
    %1 = vector.shape_cast %0 : vector<1x8x32xf32> to vector<8x32xf32>
    %c0_2 = arith.constant 0 : index
    %c0_3 = arith.constant 0 : index
    %c0_4 = arith.constant 0 : index
    %2 = vector.load %arg3[%c0_2, %c0_3, %c0_4] : memref<1x128x32xf32, #tpu.memory_space<vmem>>, vector<1x128x32xf32>
    %3 = vector.shape_cast %2 : vector<1x128x32xf32> to vector<128x32xf32>
    %c0_5 = arith.constant 0 : index
    %c0_6 = arith.constant 0 : index
    %4 = vector.load %arg6[%c0_5, %c0_6] : memref<32x32xbf16, #tpu.memory_space<vmem>>, vector<32x32xbf16>
    %5 = arith.truncf %1 : vector<8x32xf32> to vector<8x32xbf16>
    %cst = arith.constant dense<0.000000e+00> : vector<8x32xf32>
    %6 = tpu.matmul %5, %4, %cst {dimension_numbers = #tpu.dot_dimension_numbers<[1], [0], [0], [1], [0, 0, 1, 1], [], []>} : vector<8x32xbf16>, vector<32x32xbf16>, vector<8x32xf32> -> vector<8x32xf32>
    %c0_7 = arith.constant 0 : index
    %c0_8 = arith.constant 0 : index
    %7 = vector.load %arg7[%c0_7, %c0_8] : memref<1x32xf32, #tpu.memory_space<vmem>>, vector<1x32xf32>
    %8 = vector.broadcast %7 : vector<1x32xf32> to vector<8x32xf32>
    %9 = arith.addf %6, %8 : vector<8x32xf32>
    %10 = arith.truncf %9 : vector<8x32xf32> to vector<8x32xbf16>
    %c0_9 = arith.constant 0 : index
    %c0_10 = arith.constant 0 : index
    %11 = vector.load %arg8[%c0_9, %c0_10] : memref<32x64xbf16, #tpu.memory_space<vmem>>, vector<32x64xbf16>
    %12 = arith.truncf %3 : vector<128x32xf32> to vector<128x32xbf16>
    %cst_11 = arith.constant dense<0.000000e+00> : vector<128x64xf32>
    %13 = tpu.matmul %12, %11, %cst_11 {dimension_numbers = #tpu.dot_dimension_numbers<[1], [0], [0], [1], [0, 0, 1, 1], [], []>} : vector<128x32xbf16>, vector<32x64xbf16>, vector<128x64xf32> -> vector<128x64xf32>
    %c0_12 = arith.constant 0 : index
    %c0_13 = arith.constant 0 : index
    %14 = vector.load %arg9[%c0_12, %c0_13] : memref<1x64xf32, #tpu.memory_space<vmem>>, vector<1x64xf32>
    %15 = vector.broadcast %14 : vector<1x64xf32> to vector<128x64xf32>
    %16 = arith.addf %13, %15 : vector<128x64xf32>
    %17 = vector.extract_strided_slice %16 {offsets = [0, 0], sizes = [128, 32], strides = [1, 1]} : vector<128x64xf32> to vector<128x32xf32>
    %18 = arith.truncf %17 : vector<128x32xf32> to vector<128x32xbf16>
    %19 = vector.extract_strided_slice %16 {offsets = [0, 32], sizes = [128, 32], strides = [1, 1]} : vector<128x64xf32> to vector<128x32xf32>
    %20 = arith.truncf %19 : vector<128x32xf32> to vector<128x32xbf16>
    %c0_14 = arith.constant 0 : index
    %c0_15 = arith.constant 0 : index
    %c0_16 = arith.constant 0 : index
    %21 = vector.load %arg4[%c0_14, %c0_15, %c0_16] : memref<1x1x128xf32, #tpu.memory_space<vmem>>, vector<1x1x128xf32>
    %22 = vector.shape_cast %21 : vector<1x1x128xf32> to vector<1x128xf32>
    %cst_17 = arith.constant 5.000000e-01 : f32
    %23 = vector.broadcast %cst_17 : f32 to vector<1x128xf32>
    %24 = arith.cmpf ogt, %22, %23 : vector<1x128xf32>
    %c8_i32 = arith.constant 8 : i32
    %25 = arith.muli %arg1, %c8_i32 : i32
    %26 = tpu.iota {dimensions = array<i32: 0>} : vector<8x128xi32>
    %27 = vector.broadcast %25 : i32 to vector<8x128xi32>
    %28 = arith.addi %26, %27 : vector<8x128xi32>
    %29 = tpu.iota {dimensions = array<i32: 1>} : vector<8x128xi32>
    %30 = arith.cmpi sgt, %29, %28 : vector<8x128xi32>
    %31 = vector.broadcast %24 : vector<1x128xi1> to vector<8x128xi1>
    %32 = arith.ori %31, %30 : vector<8x128xi1>
    %33 = vector.extract_strided_slice %10 {offsets = [0, 0], sizes = [8, 16], strides = [1, 1]} : vector<8x32xbf16> to vector<8x16xbf16>
    %34 = vector.extract_strided_slice %18 {offsets = [0, 0], sizes = [128, 16], strides = [1, 1]} : vector<128x32xbf16> to vector<128x16xbf16>
    %35 = vector.extract_strided_slice %20 {offsets = [0, 0], sizes = [128, 16], strides = [1, 1]} : vector<128x32xbf16> to vector<128x16xbf16>
    %cst_18 = arith.constant dense<0.000000e+00> : vector<8x128xf32>
    %36 = tpu.matmul %33, %34, %cst_18 {dimension_numbers = #tpu.dot_dimension_numbers<[1], [1], [0], [0], [0, 0, 1, 0], [], []>} : vector<8x16xbf16>, vector<128x16xbf16>, vector<8x128xf32> -> vector<8x128xf32>
    %cst_19 = arith.constant 2.500000e-01 : f32
    %37 = vector.broadcast %cst_19 : f32 to vector<8x128xf32>
    %38 = arith.mulf %36, %37 : vector<8x128xf32>
    %cst_20 = arith.constant -1.000000e+09 : f32
    %39 = vector.broadcast %cst_20 : f32 to vector<8x128xf32>
    %40 = arith.select %32, %39, %38 : vector<8x128xi1>, vector<8x128xf32>
    %cst_21 = arith.constant dense<0xFF800000> : vector<8xf32>
    %41 = vector.multi_reduction <maximumf>, %40, %cst_21 [1] : vector<8x128xf32> to vector<8xf32>
    %42 = vector.shape_cast %41 : vector<8xf32> to vector<8x1xf32>
    %43 = vector.broadcast %42 : vector<8x1xf32> to vector<8x128xf32>
    %44 = arith.subf %40, %43 : vector<8x128xf32>
    %45 = math.exp %44 : vector<8x128xf32>
    %cst_22 = arith.constant dense<0.000000e+00> : vector<8xf32>
    %46 = vector.multi_reduction <add>, %45, %cst_22 [1] : vector<8x128xf32> to vector<8xf32>
    %47 = vector.shape_cast %46 : vector<8xf32> to vector<8x1xf32>
    %48 = tpu.reciprocal %47 {approx = true} : vector<8x1xf32> -> vector<8x1xf32>
    %49 = vector.broadcast %48 : vector<8x1xf32> to vector<8x128xf32>
    %50 = arith.mulf %45, %49 : vector<8x128xf32>
    %51 = arith.truncf %50 : vector<8x128xf32> to vector<8x128xbf16>
    %cst_23 = arith.constant dense<0.000000e+00> : vector<8x16xf32>
    %52 = tpu.matmul %51, %35, %cst_23 {dimension_numbers = #tpu.dot_dimension_numbers<[1], [0], [0], [1], [0, 0, 1, 1], [], []>} : vector<8x128xbf16>, vector<128x16xbf16>, vector<8x16xf32> -> vector<8x16xf32>
    %53 = vector.extract_strided_slice %10 {offsets = [0, 16], sizes = [8, 16], strides = [1, 1]} : vector<8x32xbf16> to vector<8x16xbf16>
    %54 = vector.extract_strided_slice %18 {offsets = [0, 16], sizes = [128, 16], strides = [1, 1]} : vector<128x32xbf16> to vector<128x16xbf16>
    %55 = vector.extract_strided_slice %20 {offsets = [0, 16], sizes = [128, 16], strides = [1, 1]} : vector<128x32xbf16> to vector<128x16xbf16>
    %cst_24 = arith.constant dense<0.000000e+00> : vector<8x128xf32>
    %56 = tpu.matmul %53, %54, %cst_24 {dimension_numbers = #tpu.dot_dimension_numbers<[1], [1], [0], [0], [0, 0, 1, 0], [], []>} : vector<8x16xbf16>, vector<128x16xbf16>, vector<8x128xf32> -> vector<8x128xf32>
    %cst_25 = arith.constant 2.500000e-01 : f32
    %57 = vector.broadcast %cst_25 : f32 to vector<8x128xf32>
    %58 = arith.mulf %56, %57 : vector<8x128xf32>
    %cst_26 = arith.constant -1.000000e+09 : f32
    %59 = vector.broadcast %cst_26 : f32 to vector<8x128xf32>
    %60 = arith.select %32, %59, %58 : vector<8x128xi1>, vector<8x128xf32>
    %cst_27 = arith.constant dense<0xFF800000> : vector<8xf32>
    %61 = vector.multi_reduction <maximumf>, %60, %cst_27 [1] : vector<8x128xf32> to vector<8xf32>
    %62 = vector.shape_cast %61 : vector<8xf32> to vector<8x1xf32>
    %63 = vector.broadcast %62 : vector<8x1xf32> to vector<8x128xf32>
    %64 = arith.subf %60, %63 : vector<8x128xf32>
    %65 = math.exp %64 : vector<8x128xf32>
    %cst_28 = arith.constant dense<0.000000e+00> : vector<8xf32>
    %66 = vector.multi_reduction <add>, %65, %cst_28 [1] : vector<8x128xf32> to vector<8xf32>
    %67 = vector.shape_cast %66 : vector<8xf32> to vector<8x1xf32>
    %68 = tpu.reciprocal %67 {approx = true} : vector<8x1xf32> -> vector<8x1xf32>
    %69 = vector.broadcast %68 : vector<8x1xf32> to vector<8x128xf32>
    %70 = arith.mulf %65, %69 : vector<8x128xf32>
    %71 = arith.truncf %70 : vector<8x128xf32> to vector<8x128xbf16>
    %cst_29 = arith.constant dense<0.000000e+00> : vector<8x16xf32>
    %72 = tpu.matmul %71, %55, %cst_29 {dimension_numbers = #tpu.dot_dimension_numbers<[1], [0], [0], [1], [0, 0, 1, 1], [], []>} : vector<8x128xbf16>, vector<128x16xbf16>, vector<8x16xf32> -> vector<8x16xf32>
    %73 = tpu.concatenate %52, %72 in 1 : vector<8x16xf32>, vector<8x16xf32> -> vector<8x32xf32>
    %c0_30 = arith.constant 0 : index
    %c0_31 = arith.constant 0 : index
    %74 = vector.load %arg10[%c0_30, %c0_31] : memref<32x32xbf16, #tpu.memory_space<vmem>>, vector<32x32xbf16>
    %75 = arith.truncf %73 : vector<8x32xf32> to vector<8x32xbf16>
    %cst_32 = arith.constant dense<0.000000e+00> : vector<8x32xf32>
    %76 = tpu.matmul %75, %74, %cst_32 {dimension_numbers = #tpu.dot_dimension_numbers<[1], [0], [0], [1], [0, 0, 1, 1], [], []>} : vector<8x32xbf16>, vector<32x32xbf16>, vector<8x32xf32> -> vector<8x32xf32>
    %c0_33 = arith.constant 0 : index
    %c0_34 = arith.constant 0 : index
    %77 = vector.load %arg11[%c0_33, %c0_34] : memref<1x32xf32, #tpu.memory_space<vmem>>, vector<1x32xf32>
    %78 = vector.broadcast %77 : vector<1x32xf32> to vector<8x32xf32>
    %79 = arith.addf %76, %78 : vector<8x32xf32>
    %80 = arith.addf %79, %1 : vector<8x32xf32>
    %c0_35 = arith.constant 0 : index
    %c0_36 = arith.constant 0 : index
    %81 = vector.load %arg12[%c0_35, %c0_36] : memref<1x32xf32, #tpu.memory_space<vmem>>, vector<1x32xf32>
    %c0_37 = arith.constant 0 : index
    %c0_38 = arith.constant 0 : index
    %82 = vector.load %arg13[%c0_37, %c0_38] : memref<1x32xf32, #tpu.memory_space<vmem>>, vector<1x32xf32>
    %cst_39 = arith.constant dense<0.000000e+00> : vector<8xf32>
    %83 = vector.multi_reduction <add>, %80, %cst_39 [1] : vector<8x32xf32> to vector<8xf32>
    %84 = vector.shape_cast %83 : vector<8xf32> to vector<8x1xf32>
    %cst_40 = arith.constant 3.200000e+01 : f32
    %85 = vector.broadcast %cst_40 : f32 to vector<8x1xf32>
    %86 = arith.divf %84, %85 : vector<8x1xf32>
    %87 = vector.broadcast %86 : vector<8x1xf32> to vector<8x32xf32>
    %88 = arith.subf %80, %87 : vector<8x32xf32>
    %89 = arith.mulf %88, %88 : vector<8x32xf32>
    %cst_41 = arith.constant dense<0.000000e+00> : vector<8xf32>
    %90 = vector.multi_reduction <add>, %89, %cst_41 [1] : vector<8x32xf32> to vector<8xf32>
    %91 = vector.shape_cast %90 : vector<8xf32> to vector<8x1xf32>
    %cst_42 = arith.constant 3.200000e+01 : f32
    %92 = vector.broadcast %cst_42 : f32 to vector<8x1xf32>
    %93 = arith.divf %91, %92 : vector<8x1xf32>
    %94 = vector.broadcast %86 : vector<8x1xf32> to vector<8x32xf32>
    %95 = arith.subf %80, %94 : vector<8x32xf32>
    %cst_43 = arith.constant 9.99999974E-6 : f32
    %96 = vector.broadcast %cst_43 : f32 to vector<8x1xf32>
    %97 = arith.addf %93, %96 : vector<8x1xf32>
    %98 = math.rsqrt %97 : vector<8x1xf32>
    %99 = vector.broadcast %98 : vector<8x1xf32> to vector<8x32xf32>
    %100 = arith.mulf %95, %99 : vector<8x32xf32>
    %101 = vector.broadcast %81 : vector<1x32xf32> to vector<8x32xf32>
    %102 = arith.mulf %100, %101 : vector<8x32xf32>
    %103 = vector.broadcast %82 : vector<1x32xf32> to vector<8x32xf32>
    %104 = arith.addf %102, %103 : vector<8x32xf32>
    %c0_44 = arith.constant 0 : index
    %c0_45 = arith.constant 0 : index
    %c0_46 = arith.constant 0 : index
    %105 = vector.load %arg5[%c0_44, %c0_45, %c0_46] : memref<1x8x1xf32, #tpu.memory_space<vmem>>, vector<1x8x1xf32>
    %106 = vector.shape_cast %105 : vector<1x8x1xf32> to vector<8x1xf32>
    %107 = vector.broadcast %106 : vector<8x1xf32> to vector<8x32xf32>
    %108 = arith.mulf %104, %107 : vector<8x32xf32>
    %109 = vector.shape_cast %108 : vector<8x32xf32> to vector<1x8x32xf32>
    %c0_47 = arith.constant 0 : index
    %c0_48 = arith.constant 0 : index
    %c0_49 = arith.constant 0 : index
    %110 = vector.load %arg14[%c0_47, %c0_48, %c0_49] : memref<1x8x32xf32, #tpu.memory_space<vmem>>, vector<1x8x32xf32>
    tpu.vector_store %arg14[%c0_47, %c0_48, %c0_49], %109 {strides = array<i32>} : memref<1x8x32xf32, #tpu.memory_space<vmem>>, vector<1x8x32xf32>,
    return
  }
  func.func @transform_0(%arg0: i32, %arg1: i32) -> (i32, i32, i32) {
    %c0_i32 = arith.constant 0 : i32
    %c0_i32_0 = arith.constant 0 : i32
    return %arg0, %arg1, %c0_i32 : i32, i32, i32
  }
  func.func @transform_1(%arg0: i32, %arg1: i32) -> (i32, i32, i32) {
    %c0_i32 = arith.constant 0 : i32
    %c0_i32_0 = arith.constant 0 : i32
    %c0_i32_1 = arith.constant 0 : i32
    return %arg0, %c0_i32, %c0_i32_0 : i32, i32, i32
  }
  func.func @transform_2(%arg0: i32, %arg1: i32) -> (i32, i32, i32) {
    %c0_i32 = arith.constant 0 : i32
    %c0_i32_0 = arith.constant 0 : i32
    %c0_i32_1 = arith.constant 0 : i32
    return %arg0, %c0_i32, %c0_i32_0 : i32, i32, i32
  }
  func.func @transform_3(%arg0: i32, %arg1: i32) -> (i32, i32, i32) {
    %c0_i32 = arith.constant 0 : i32
    %c0_i32_0 = arith.constant 0 : i32
    return %arg0, %arg1, %c0_i32 : i32, i32, i32
  }
  func.func @transform_4(%arg0: i32, %arg1: i32) -> (i32, i32) {
    %c0_i32 = arith.constant 0 : i32
    %c0_i32_0 = arith.constant 0 : i32
    %c0_i32_1 = arith.constant 0 : i32
    return %c0_i32, %c0_i32_0 : i32, i32
  }
  func.func @transform_5(%arg0: i32, %arg1: i32) -> (i32, i32) {
    %c0_i32 = arith.constant 0 : i32
    %c0_i32_0 = arith.constant 0 : i32
    %c0_i32_1 = arith.constant 0 : i32
    return %c0_i32, %c0_i32_0 : i32, i32
  }
  func.func @transform_6(%arg0: i32, %arg1: i32) -> (i32, i32) {
    %c0_i32 = arith.constant 0 : i32
    %c0_i32_0 = arith.constant 0 : i32
    %c0_i32_1 = arith.constant 0 : i32
    return %c0_i32, %c0_i32_0 : i32, i32
  }
  func.func @transform_7(%arg0: i32, %arg1: i32) -> (i32, i32) {
    %c0_i32 = arith.constant 0 : i32
    %c0_i32_0 = arith.constant 0 : i32
    %c0_i32_1 = arith.constant 0 : i32
    return %c0_i32, %c0_i32_0 : i32, i32
  }
  func.func @transform_8(%arg0: i32, %arg1: i32) -> (i32, i32) {
    %c0_i32 = arith.constant 0 : i32
    %c0_i32_0 = arith.constant 0 : i32
    %c0_i32_1 = arith.constant 0 : i32
    return %c0_i32, %c0_i32_0 : i32, i32
  }
  func.func @transform_9(%arg0: i32, %arg1: i32) -> (i32, i32) {
    %c0_i32 = arith.constant 0 : i32
    %c0_i32_0 = arith.constant 0 : i32
    %c0_i32_1 = arith.constant 0 : i32
    return %c0_i32, %c0_i32_0 : i32, i32
  }
  func.func @transform_10(%arg0: i32, %arg1: i32) -> (i32, i32) {
    %c0_i32 = arith.constant 0 : i32
    %c0_i32_0 = arith.constant 0 : i32
    %c0_i32_1 = arith.constant 0 : i32
    return %c0_i32, %c0_i32_0 : i32, i32
  }
  func.func @transform_11(%arg0: i32, %arg1: i32) -> (i32, i32) {
    %c0_i32 = arith.constant 0 : i32
    %c0_i32_0 = arith.constant 0 : i32
    %c0_i32_1 = arith.constant 0 : i32
    return %c0_i32, %c0_i32_0 : i32, i32
  }
  func.func @transform_12(%arg0: i32, %arg1: i32) -> (i32, i32, i32) {
    %c0_i32 = arith.constant 0 : i32
    %c0_i32_0 = arith.constant 0 : i32
    return %arg0, %arg1, %c0_i32 : i32, i32, i32
  }
}

module attributes {stable_mosaic.version = 11 : i64} {
  func.func @_mha_block_kernel(%arg0: i32, %arg1: i32, %arg2: memref<1x8x32xf32, #tpu.memory_space<vmem>>, %arg3: memref<1x128x32xf32, #tpu.memory_space<vmem>>, %arg4: memref<1x1x128xf32, #tpu.memory_space<vmem>>, %arg5: memref<1x8x1xf32, #tpu.memory_space<vmem>>, %arg6: memref<32x32xbf16, #tpu.memory_space<vmem>>, %arg7: memref<1x32xf32, #tpu.memory_space<vmem>>, %arg8: memref<32x64xbf16, #tpu.memory_space<vmem>>, %arg9: memref<1x64xf32, #tpu.memory_space<vmem>>, %arg10: memref<32x32xbf16, #tpu.memory_space<vmem>>, %arg11: memref<1x32xf32, #tpu.memory_space<vmem>>, %arg12: memref<1x32xf32, #tpu.memory_space<vmem>>, %arg13: memref<1x32xf32, #tpu.memory_space<vmem>>, %arg14: memref<1x8x32xf32, #tpu.memory_space<vmem>>, %arg15: memref<2x1x8x128xbf16, #tpu.memory_space<vmem>>) attributes {dimension_semantics = [#tpu.dimension_semantics<parallel>, #tpu.dimension_semantics<parallel>], iteration_bounds = array<i64: 2, 1>, scalar_prefetch = 0 : i64, scratch_operands = 0 : i64, tpu.core_type = #tpu.core_type<tc>, window_params = [{transform_indices = @transform_0, window_bounds = array<i64: 1, 8, 32>}, {transform_indices = @transform_1, window_bounds = array<i64: 1, 128, 32>}, {transform_indices = @transform_2, window_bounds = array<i64: 1, 1, 128>}, {transform_indices = @transform_3, window_bounds = array<i64: 1, 8, 1>}, {pipeline_mode = #tpu.pipeline_mode<synchronous>, transform_indices = @transform_4, window_bounds = array<i64: 32, 32>}, {pipeline_mode = #tpu.pipeline_mode<synchronous>, transform_indices = @transform_5, window_bounds = array<i64: 1, 32>}, {pipeline_mode = #tpu.pipeline_mode<synchronous>, transform_indices = @transform_6, window_bounds = array<i64: 32, 64>}, {pipeline_mode = #tpu.pipeline_mode<synchronous>, transform_indices = @transform_7, window_bounds = array<i64: 1, 64>}, {pipeline_mode = #tpu.pipeline_mode<synchronous>, transform_indices = @transform_8, window_bounds = array<i64: 32, 32>}, {pipeline_mode = #tpu.pipeline_mode<synchronous>, transform_indices = @transform_9, window_bounds = array<i64: 1, 32>}, {pipeline_mode = #tpu.pipeline_mode<synchronous>, transform_indices = @transform_10, window_bounds = array<i64: 1, 32>}, {pipeline_mode = #tpu.pipeline_mode<synchronous>, transform_indices = @transform_11, window_bounds = array<i64: 1, 32>}, {transform_indices = @transform_12, window_bounds = array<i64: 1, 8, 32>}, {transform_indices = @transform_13, window_bounds = array<i64: 2, 1, 8, 128>}]} {
    %c0 = arith.constant 0 : index
    %c0_0 = arith.constant 0 : index
    %c0_1 = arith.constant 0 : index
    %0 = vector.load %arg2[%c0, %c0_0, %c0_1] : memref<1x8x32xf32, #tpu.memory_space<vmem>>, vector<1x8x32xf32>
    %1 = vector.shape_cast %0 : vector<1x8x32xf32> to vector<8x32xf32>
    %c0_2 = arith.constant 0 : index
    %c0_3 = arith.constant 0 : index
    %c0_4 = arith.constant 0 : index
    %2 = vector.load %arg3[%c0_2, %c0_3, %c0_4] : memref<1x128x32xf32, #tpu.memory_space<vmem>>, vector<1x128x32xf32>
    %3 = vector.shape_cast %2 : vector<1x128x32xf32> to vector<128x32xf32>
    %c0_5 = arith.constant 0 : index
    %c0_6 = arith.constant 0 : index
    %4 = vector.load %arg6[%c0_5, %c0_6] : memref<32x32xbf16, #tpu.memory_space<vmem>>, vector<32x32xbf16>
    %5 = arith.truncf %1 : vector<8x32xf32> to vector<8x32xbf16>
    %cst = arith.constant dense<0.000000e+00> : vector<8x32xf32>
    %6 = tpu.matmul %5, %4, %cst {dimension_numbers = #tpu.dot_dimension_numbers<[1], [0], [0], [1], [0, 0, 1, 1], [], []>} : vector<8x32xbf16>, vector<32x32xbf16>, vector<8x32xf32> -> vector<8x32xf32>
    %c0_7 = arith.constant 0 : index
    %c0_8 = arith.constant 0 : index
    %7 = vector.load %arg7[%c0_7, %c0_8] : memref<1x32xf32, #tpu.memory_space<vmem>>, vector<1x32xf32>
    %8 = vector.broadcast %7 : vector<1x32xf32> to vector<8x32xf32>
    %9 = arith.addf %6, %8 : vector<8x32xf32>
    %10 = arith.truncf %9 : vector<8x32xf32> to vector<8x32xbf16>
    %c0_9 = arith.constant 0 : index
    %c0_10 = arith.constant 0 : index
    %11 = vector.load %arg8[%c0_9, %c0_10] : memref<32x64xbf16, #tpu.memory_space<vmem>>, vector<32x64xbf16>
    %12 = arith.truncf %3 : vector<128x32xf32> to vector<128x32xbf16>
    %cst_11 = arith.constant dense<0.000000e+00> : vector<128x64xf32>
    %13 = tpu.matmul %12, %11, %cst_11 {dimension_numbers = #tpu.dot_dimension_numbers<[1], [0], [0], [1], [0, 0, 1, 1], [], []>} : vector<128x32xbf16>, vector<32x64xbf16>, vector<128x64xf32> -> vector<128x64xf32>
    %c0_12 = arith.constant 0 : index
    %c0_13 = arith.constant 0 : index
    %14 = vector.load %arg9[%c0_12, %c0_13] : memref<1x64xf32, #tpu.memory_space<vmem>>, vector<1x64xf32>
    %15 = vector.broadcast %14 : vector<1x64xf32> to vector<128x64xf32>
    %16 = arith.addf %13, %15 : vector<128x64xf32>
    %17 = vector.extract_strided_slice %16 {offsets = [0, 0], sizes = [128, 32], strides = [1, 1]} : vector<128x64xf32> to vector<128x32xf32>
    %18 = arith.truncf %17 : vector<128x32xf32> to vector<128x32xbf16>
    %19 = vector.extract_strided_slice %16 {offsets = [0, 32], sizes = [128, 32], strides = [1, 1]} : vector<128x64xf32> to vector<128x32xf32>
    %20 = arith.truncf %19 : vector<128x32xf32> to vector<128x32xbf16>
    %c0_14 = arith.constant 0 : index
    %c0_15 = arith.constant 0 : index
    %c0_16 = arith.constant 0 : index
    %21 = vector.load %arg4[%c0_14, %c0_15, %c0_16] : memref<1x1x128xf32, #tpu.memory_space<vmem>>, vector<1x1x128xf32>
    %22 = vector.shape_cast %21 : vector<1x1x128xf32> to vector<1x128xf32>
    %cst_17 = arith.constant 5.000000e-01 : f32
    %23 = vector.broadcast %cst_17 : f32 to vector<1x128xf32>
    %24 = arith.cmpf ogt, %22, %23 : vector<1x128xf32>
    %25 = vector.shape_cast %24 : vector<1x128xi1> to vector<1x128xi1>
    %26 = vector.broadcast %25 : vector<1x128xi1> to vector<8x128xi1>
    %27 = vector.extract_strided_slice %10 {offsets = [0, 0], sizes = [8, 16], strides = [1, 1]} : vector<8x32xbf16> to vector<8x16xbf16>
    %28 = vector.extract_strided_slice %18 {offsets = [0, 0], sizes = [128, 16], strides = [1, 1]} : vector<128x32xbf16> to vector<128x16xbf16>
    %29 = vector.extract_strided_slice %20 {offsets = [0, 0], sizes = [128, 16], strides = [1, 1]} : vector<128x32xbf16> to vector<128x16xbf16>
    %cst_18 = arith.constant dense<0.000000e+00> : vector<8x128xf32>
    %30 = tpu.matmul %27, %28, %cst_18 {dimension_numbers = #tpu.dot_dimension_numbers<[1], [1], [0], [0], [0, 0, 1, 0], [], []>} : vector<8x16xbf16>, vector<128x16xbf16>, vector<8x128xf32> -> vector<8x128xf32>
    %cst_19 = arith.constant 2.500000e-01 : f32
    %31 = vector.broadcast %cst_19 : f32 to vector<8x128xf32>
    %32 = arith.mulf %30, %31 : vector<8x128xf32>
    %cst_20 = arith.constant -1.000000e+09 : f32
    %33 = vector.broadcast %cst_20 : f32 to vector<8x128xf32>
    %34 = arith.select %26, %33, %32 : vector<8x128xi1>, vector<8x128xf32>
    %cst_21 = arith.constant dense<0xFF800000> : vector<8xf32>
    %35 = vector.multi_reduction <maximumf>, %34, %cst_21 [1] : vector<8x128xf32> to vector<8xf32>
    %36 = vector.shape_cast %35 : vector<8xf32> to vector<8x1xf32>
    %37 = vector.broadcast %36 : vector<8x1xf32> to vector<8x128xf32>
    %38 = arith.subf %34, %37 : vector<8x128xf32>
    %39 = math.exp %38 : vector<8x128xf32>
    %cst_22 = arith.constant dense<0.000000e+00> : vector<8xf32>
    %40 = vector.multi_reduction <add>, %39, %cst_22 [1] : vector<8x128xf32> to vector<8xf32>
    %41 = vector.shape_cast %40 : vector<8xf32> to vector<8x1xf32>
    %42 = tpu.reciprocal %41 {approx = true} : vector<8x1xf32> -> vector<8x1xf32>
    %43 = vector.broadcast %42 : vector<8x1xf32> to vector<8x128xf32>
    %44 = arith.mulf %39, %43 : vector<8x128xf32>
    %45 = arith.truncf %44 : vector<8x128xf32> to vector<8x128xbf16>
    %c0_23 = arith.constant 0 : index
    %c0_24 = arith.constant 0 : index
    %c0_25 = arith.constant 0 : index
    %c0_26 = arith.constant 0 : index
    %46 = vector.load %arg15[%c0_23, %c0_24, %c0_25, %c0_26] : memref<2x1x8x128xbf16, #tpu.memory_space<vmem>>, vector<1x1x8x128xbf16>
    %47 = vector.shape_cast %46 : vector<1x1x8x128xbf16> to vector<8x128xbf16>
    %48 = vector.shape_cast %45 : vector<8x128xbf16> to vector<1x1x8x128xbf16>
    tpu.vector_store %arg15[%c0_23, %c0_24, %c0_25, %c0_26], %48 {strides = array<i32>} : memref<2x1x8x128xbf16, #tpu.memory_space<vmem>>, vector<1x1x8x128xbf16>,
    %49 = arith.truncf %44 : vector<8x128xf32> to vector<8x128xbf16>
    %cst_27 = arith.constant dense<0.000000e+00> : vector<8x16xf32>
    %50 = tpu.matmul %49, %29, %cst_27 {dimension_numbers = #tpu.dot_dimension_numbers<[1], [0], [0], [1], [0, 0, 1, 1], [], []>} : vector<8x128xbf16>, vector<128x16xbf16>, vector<8x16xf32> -> vector<8x16xf32>
    %51 = vector.extract_strided_slice %10 {offsets = [0, 16], sizes = [8, 16], strides = [1, 1]} : vector<8x32xbf16> to vector<8x16xbf16>
    %52 = vector.extract_strided_slice %18 {offsets = [0, 16], sizes = [128, 16], strides = [1, 1]} : vector<128x32xbf16> to vector<128x16xbf16>
    %53 = vector.extract_strided_slice %20 {offsets = [0, 16], sizes = [128, 16], strides = [1, 1]} : vector<128x32xbf16> to vector<128x16xbf16>
    %cst_28 = arith.constant dense<0.000000e+00> : vector<8x128xf32>
    %54 = tpu.matmul %51, %52, %cst_28 {dimension_numbers = #tpu.dot_dimension_numbers<[1], [1], [0], [0], [0, 0, 1, 0], [], []>} : vector<8x16xbf16>, vector<128x16xbf16>, vector<8x128xf32> -> vector<8x128xf32>
    %cst_29 = arith.constant 2.500000e-01 : f32
    %55 = vector.broadcast %cst_29 : f32 to vector<8x128xf32>
    %56 = arith.mulf %54, %55 : vector<8x128xf32>
    %cst_30 = arith.constant -1.000000e+09 : f32
    %57 = vector.broadcast %cst_30 : f32 to vector<8x128xf32>
    %58 = arith.select %26, %57, %56 : vector<8x128xi1>, vector<8x128xf32>
    %cst_31 = arith.constant dense<0xFF800000> : vector<8xf32>
    %59 = vector.multi_reduction <maximumf>, %58, %cst_31 [1] : vector<8x128xf32> to vector<8xf32>
    %60 = vector.shape_cast %59 : vector<8xf32> to vector<8x1xf32>
    %61 = vector.broadcast %60 : vector<8x1xf32> to vector<8x128xf32>
    %62 = arith.subf %58, %61 : vector<8x128xf32>
    %63 = math.exp %62 : vector<8x128xf32>
    %cst_32 = arith.constant dense<0.000000e+00> : vector<8xf32>
    %64 = vector.multi_reduction <add>, %63, %cst_32 [1] : vector<8x128xf32> to vector<8xf32>
    %65 = vector.shape_cast %64 : vector<8xf32> to vector<8x1xf32>
    %66 = tpu.reciprocal %65 {approx = true} : vector<8x1xf32> -> vector<8x1xf32>
    %67 = vector.broadcast %66 : vector<8x1xf32> to vector<8x128xf32>
    %68 = arith.mulf %63, %67 : vector<8x128xf32>
    %69 = arith.truncf %68 : vector<8x128xf32> to vector<8x128xbf16>
    %c1 = arith.constant 1 : index
    %c0_33 = arith.constant 0 : index
    %c0_34 = arith.constant 0 : index
    %c0_35 = arith.constant 0 : index
    %70 = vector.load %arg15[%c1, %c0_33, %c0_34, %c0_35] : memref<2x1x8x128xbf16, #tpu.memory_space<vmem>>, vector<1x1x8x128xbf16>
    %71 = vector.shape_cast %70 : vector<1x1x8x128xbf16> to vector<8x128xbf16>
    %72 = vector.shape_cast %69 : vector<8x128xbf16> to vector<1x1x8x128xbf16>
    tpu.vector_store %arg15[%c1, %c0_33, %c0_34, %c0_35], %72 {strides = array<i32>} : memref<2x1x8x128xbf16, #tpu.memory_space<vmem>>, vector<1x1x8x128xbf16>,
    %73 = arith.truncf %68 : vector<8x128xf32> to vector<8x128xbf16>
    %cst_36 = arith.constant dense<0.000000e+00> : vector<8x16xf32>
    %74 = tpu.matmul %73, %53, %cst_36 {dimension_numbers = #tpu.dot_dimension_numbers<[1], [0], [0], [1], [0, 0, 1, 1], [], []>} : vector<8x128xbf16>, vector<128x16xbf16>, vector<8x16xf32> -> vector<8x16xf32>
    %75 = tpu.concatenate %50, %74 in 1 : vector<8x16xf32>, vector<8x16xf32> -> vector<8x32xf32>
    %c0_37 = arith.constant 0 : index
    %c0_38 = arith.constant 0 : index
    %76 = vector.load %arg10[%c0_37, %c0_38] : memref<32x32xbf16, #tpu.memory_space<vmem>>, vector<32x32xbf16>
    %77 = arith.truncf %75 : vector<8x32xf32> to vector<8x32xbf16>
    %cst_39 = arith.constant dense<0.000000e+00> : vector<8x32xf32>
    %78 = tpu.matmul %77, %76, %cst_39 {dimension_numbers = #tpu.dot_dimension_numbers<[1], [0], [0], [1], [0, 0, 1, 1], [], []>} : vector<8x32xbf16>, vector<32x32xbf16>, vector<8x32xf32> -> vector<8x32xf32>
    %c0_40 = arith.constant 0 : index
    %c0_41 = arith.constant 0 : index
    %79 = vector.load %arg11[%c0_40, %c0_41] : memref<1x32xf32, #tpu.memory_space<vmem>>, vector<1x32xf32>
    %80 = vector.broadcast %79 : vector<1x32xf32> to vector<8x32xf32>
    %81 = arith.addf %78, %80 : vector<8x32xf32>
    %82 = arith.addf %81, %1 : vector<8x32xf32>
    %c0_42 = arith.constant 0 : index
    %c0_43 = arith.constant 0 : index
    %83 = vector.load %arg12[%c0_42, %c0_43] : memref<1x32xf32, #tpu.memory_space<vmem>>, vector<1x32xf32>
    %c0_44 = arith.constant 0 : index
    %c0_45 = arith.constant 0 : index
    %84 = vector.load %arg13[%c0_44, %c0_45] : memref<1x32xf32, #tpu.memory_space<vmem>>, vector<1x32xf32>
    %cst_46 = arith.constant dense<0.000000e+00> : vector<8xf32>
    %85 = vector.multi_reduction <add>, %82, %cst_46 [1] : vector<8x32xf32> to vector<8xf32>
    %86 = vector.shape_cast %85 : vector<8xf32> to vector<8x1xf32>
    %cst_47 = arith.constant 3.200000e+01 : f32
    %87 = vector.broadcast %cst_47 : f32 to vector<8x1xf32>
    %88 = arith.divf %86, %87 : vector<8x1xf32>
    %89 = vector.broadcast %88 : vector<8x1xf32> to vector<8x32xf32>
    %90 = arith.subf %82, %89 : vector<8x32xf32>
    %91 = arith.mulf %90, %90 : vector<8x32xf32>
    %cst_48 = arith.constant dense<0.000000e+00> : vector<8xf32>
    %92 = vector.multi_reduction <add>, %91, %cst_48 [1] : vector<8x32xf32> to vector<8xf32>
    %93 = vector.shape_cast %92 : vector<8xf32> to vector<8x1xf32>
    %cst_49 = arith.constant 3.200000e+01 : f32
    %94 = vector.broadcast %cst_49 : f32 to vector<8x1xf32>
    %95 = arith.divf %93, %94 : vector<8x1xf32>
    %96 = vector.broadcast %88 : vector<8x1xf32> to vector<8x32xf32>
    %97 = arith.subf %82, %96 : vector<8x32xf32>
    %cst_50 = arith.constant 9.99999974E-6 : f32
    %98 = vector.broadcast %cst_50 : f32 to vector<8x1xf32>
    %99 = arith.addf %95, %98 : vector<8x1xf32>
    %100 = math.rsqrt %99 : vector<8x1xf32>
    %101 = vector.broadcast %100 : vector<8x1xf32> to vector<8x32xf32>
    %102 = arith.mulf %97, %101 : vector<8x32xf32>
    %103 = vector.broadcast %83 : vector<1x32xf32> to vector<8x32xf32>
    %104 = arith.mulf %102, %103 : vector<8x32xf32>
    %105 = vector.broadcast %84 : vector<1x32xf32> to vector<8x32xf32>
    %106 = arith.addf %104, %105 : vector<8x32xf32>
    %c0_51 = arith.constant 0 : index
    %c0_52 = arith.constant 0 : index
    %c0_53 = arith.constant 0 : index
    %107 = vector.load %arg5[%c0_51, %c0_52, %c0_53] : memref<1x8x1xf32, #tpu.memory_space<vmem>>, vector<1x8x1xf32>
    %108 = vector.shape_cast %107 : vector<1x8x1xf32> to vector<8x1xf32>
    %109 = vector.broadcast %108 : vector<8x1xf32> to vector<8x32xf32>
    %110 = arith.mulf %106, %109 : vector<8x32xf32>
    %111 = vector.shape_cast %110 : vector<8x32xf32> to vector<1x8x32xf32>
    %c0_54 = arith.constant 0 : index
    %c0_55 = arith.constant 0 : index
    %c0_56 = arith.constant 0 : index
    %112 = vector.load %arg14[%c0_54, %c0_55, %c0_56] : memref<1x8x32xf32, #tpu.memory_space<vmem>>, vector<1x8x32xf32>
    tpu.vector_store %arg14[%c0_54, %c0_55, %c0_56], %111 {strides = array<i32>} : memref<1x8x32xf32, #tpu.memory_space<vmem>>, vector<1x8x32xf32>,
    return
  }
  func.func @transform_0(%arg0: i32, %arg1: i32) -> (i32, i32, i32) {
    %c0_i32 = arith.constant 0 : i32
    %c0_i32_0 = arith.constant 0 : i32
    return %arg0, %arg1, %c0_i32 : i32, i32, i32
  }
  func.func @transform_1(%arg0: i32, %arg1: i32) -> (i32, i32, i32) {
    %c0_i32 = arith.constant 0 : i32
    %c0_i32_0 = arith.constant 0 : i32
    %c0_i32_1 = arith.constant 0 : i32
    return %arg0, %c0_i32, %c0_i32_0 : i32, i32, i32
  }
  func.func @transform_2(%arg0: i32, %arg1: i32) -> (i32, i32, i32) {
    %c0_i32 = arith.constant 0 : i32
    %c0_i32_0 = arith.constant 0 : i32
    %c0_i32_1 = arith.constant 0 : i32
    return %arg0, %c0_i32, %c0_i32_0 : i32, i32, i32
  }
  func.func @transform_3(%arg0: i32, %arg1: i32) -> (i32, i32, i32) {
    %c0_i32 = arith.constant 0 : i32
    %c0_i32_0 = arith.constant 0 : i32
    return %arg0, %arg1, %c0_i32 : i32, i32, i32
  }
  func.func @transform_4(%arg0: i32, %arg1: i32) -> (i32, i32) {
    %c0_i32 = arith.constant 0 : i32
    %c0_i32_0 = arith.constant 0 : i32
    %c0_i32_1 = arith.constant 0 : i32
    return %c0_i32, %c0_i32_0 : i32, i32
  }
  func.func @transform_5(%arg0: i32, %arg1: i32) -> (i32, i32) {
    %c0_i32 = arith.constant 0 : i32
    %c0_i32_0 = arith.constant 0 : i32
    %c0_i32_1 = arith.constant 0 : i32
    return %c0_i32, %c0_i32_0 : i32, i32
  }
  func.func @transform_6(%arg0: i32, %arg1: i32) -> (i32, i32) {
    %c0_i32 = arith.constant 0 : i32
    %c0_i32_0 = arith.constant 0 : i32
    %c0_i32_1 = arith.constant 0 : i32
    return %c0_i32, %c0_i32_0 : i32, i32
  }
  func.func @transform_7(%arg0: i32, %arg1: i32) -> (i32, i32) {
    %c0_i32 = arith.constant 0 : i32
    %c0_i32_0 = arith.constant 0 : i32
    %c0_i32_1 = arith.constant 0 : i32
    return %c0_i32, %c0_i32_0 : i32, i32
  }
  func.func @transform_8(%arg0: i32, %arg1: i32) -> (i32, i32) {
    %c0_i32 = arith.constant 0 : i32
    %c0_i32_0 = arith.constant 0 : i32
    %c0_i32_1 = arith.constant 0 : i32
    return %c0_i32, %c0_i32_0 : i32, i32
  }
  func.func @transform_9(%arg0: i32, %arg1: i32) -> (i32, i32) {
    %c0_i32 = arith.constant 0 : i32
    %c0_i32_0 = arith.constant 0 : i32
    %c0_i32_1 = arith.constant 0 : i32
    return %c0_i32, %c0_i32_0 : i32, i32
  }
  func.func @transform_10(%arg0: i32, %arg1: i32) -> (i32, i32) {
    %c0_i32 = arith.constant 0 : i32
    %c0_i32_0 = arith.constant 0 : i32
    %c0_i32_1 = arith.constant 0 : i32
    return %c0_i32, %c0_i32_0 : i32, i32
  }
  func.func @transform_11(%arg0: i32, %arg1: i32) -> (i32, i32) {
    %c0_i32 = arith.constant 0 : i32
    %c0_i32_0 = arith.constant 0 : i32
    %c0_i32_1 = arith.constant 0 : i32
    return %c0_i32, %c0_i32_0 : i32, i32
  }
  func.func @transform_12(%arg0: i32, %arg1: i32) -> (i32, i32, i32) {
    %c0_i32 = arith.constant 0 : i32
    %c0_i32_0 = arith.constant 0 : i32
    return %arg0, %arg1, %c0_i32 : i32, i32, i32
  }
  func.func @transform_13(%arg0: i32, %arg1: i32) -> (i32, i32, i32, i32) {
    %c0_i32 = arith.constant 0 : i32
    %c0_i32_0 = arith.constant 0 : i32
    %c0_i32_1 = arith.constant 0 : i32
    return %c0_i32, %arg0, %arg1, %c0_i32_0 : i32, i32, i32, i32
  }
}

module attributes {stable_mosaic.version = 11 : i64} {
  func.func @_linear_acc_kernel(%arg0: i32, %arg1: i32, %arg2: i32, %arg3: memref<16x32xf32, #tpu.memory_space<vmem>>, %arg4: memref<32x128xbf16, #tpu.memory_space<vmem>>, %arg5: memref<1x128xf32, #tpu.memory_space<vmem>>, %arg6: memref<16x128xf32, #tpu.memory_space<vmem>>, %arg7: memref<16x128xf32, #tpu.memory_space<vmem>>) attributes {dimension_semantics = [#tpu.dimension_semantics<parallel>, #tpu.dimension_semantics<parallel>, #tpu.dimension_semantics<arbitrary>], iteration_bounds = array<i64: 1, 1, 1>, scalar_prefetch = 0 : i64, scratch_operands = 1 : i64, tpu.core_type = #tpu.core_type<tc>, window_params = [{transform_indices = @transform_0, window_bounds = array<i64: 16, 32>}, {transform_indices = @transform_1, window_bounds = array<i64: 32, 128>}, {transform_indices = @transform_2, window_bounds = array<i64: 1, 128>}, {transform_indices = @transform_3, window_bounds = array<i64: 16, 128>}]} {
    %c0_i32 = arith.constant 0 : i32
    %0 = arith.cmpi eq, %arg2, %c0_i32 : i32
    %1 = arith.extui %0 : i1 to i32
    %c0_i32_0 = arith.constant 0 : i32
    %2 = arith.cmpi ne, %1, %c0_i32_0 : i32
    scf.if %2 {
      %cst_10 = arith.constant 0.000000e+00 : f32
      %13 = vector.broadcast %cst_10 : f32 to vector<16x128xf32>
      %c0_11 = arith.constant 0 : index
      %c0_12 = arith.constant 0 : index
      %14 = vector.load %arg7[%c0_11, %c0_12] : memref<16x128xf32, #tpu.memory_space<vmem>>, vector<16x128xf32>
      tpu.vector_store %arg7[%c0_11, %c0_12], %13 {strides = array<i32>} : memref<16x128xf32, #tpu.memory_space<vmem>>, vector<16x128xf32>,
    } else {
    }
    %c0 = arith.constant 0 : index
    %c0_1 = arith.constant 0 : index
    %3 = vector.load %arg7[%c0, %c0_1] : memref<16x128xf32, #tpu.memory_space<vmem>>, vector<16x128xf32>
    %c0_2 = arith.constant 0 : index
    %c0_3 = arith.constant 0 : index
    %4 = vector.load %arg3[%c0_2, %c0_3] : memref<16x32xf32, #tpu.memory_space<vmem>>, vector<16x32xf32>
    %c0_4 = arith.constant 0 : index
    %c0_5 = arith.constant 0 : index
    %5 = vector.load %arg4[%c0_4, %c0_5] : memref<32x128xbf16, #tpu.memory_space<vmem>>, vector<32x128xbf16>
    %6 = arith.truncf %4 : vector<16x32xf32> to vector<16x32xbf16>
    %cst = arith.constant dense<0.000000e+00> : vector<16x128xf32>
    %7 = tpu.matmul %6, %5, %cst {dimension_numbers = #tpu.dot_dimension_numbers<[1], [0], [0], [1], [0, 0, 1, 1], [], []>} : vector<16x32xbf16>, vector<32x128xbf16>, vector<16x128xf32> -> vector<16x128xf32>
    %8 = arith.addf %3, %7 : vector<16x128xf32>
    %c0_6 = arith.constant 0 : index
    %c0_7 = arith.constant 0 : index
    %9 = vector.load %arg7[%c0_6, %c0_7] : memref<16x128xf32, #tpu.memory_space<vmem>>, vector<16x128xf32>
    tpu.vector_store %arg7[%c0_6, %c0_7], %8 {strides = array<i32>} : memref<16x128xf32, #tpu.memory_space<vmem>>, vector<16x128xf32>,
    %c0_i32_8 = arith.constant 0 : i32
    %10 = arith.cmpi eq, %arg2, %c0_i32_8 : i32
    %11 = arith.extui %10 : i1 to i32
    %c0_i32_9 = arith.constant 0 : i32
    %12 = arith.cmpi ne, %11, %c0_i32_9 : i32
    scf.if %12 {
      %c0_10 = arith.constant 0 : index
      %c0_11 = arith.constant 0 : index
      %13 = vector.load %arg7[%c0_10, %c0_11] : memref<16x128xf32, #tpu.memory_space<vmem>>, vector<16x128xf32>
      %c0_12 = arith.constant 0 : index
      %c0_13 = arith.constant 0 : index
      %14 = vector.load %arg5[%c0_12, %c0_13] : memref<1x128xf32, #tpu.memory_space<vmem>>, vector<1x128xf32>
      %15 = vector.broadcast %14 : vector<1x128xf32> to vector<16x128xf32>
      %16 = arith.addf %13, %15 : vector<16x128xf32>
      %c0_14 = arith.constant 0 : index
      %c0_15 = arith.constant 0 : index
      %17 = vector.load %arg6[%c0_14, %c0_15] : memref<16x128xf32, #tpu.memory_space<vmem>>, vector<16x128xf32>
      tpu.vector_store %arg6[%c0_14, %c0_15], %16 {strides = array<i32>} : memref<16x128xf32, #tpu.memory_space<vmem>>, vector<16x128xf32>,
    } else {
    }
    return
  }
  func.func @transform_0(%arg0: i32, %arg1: i32, %arg2: i32) -> (i32, i32) {
    %c0_i32 = arith.constant 0 : i32
    return %arg1, %arg2 : i32, i32
  }
  func.func @transform_1(%arg0: i32, %arg1: i32, %arg2: i32) -> (i32, i32) {
    %c0_i32 = arith.constant 0 : i32
    return %arg2, %arg0 : i32, i32
  }
  func.func @transform_2(%arg0: i32, %arg1: i32, %arg2: i32) -> (i32, i32) {
    %c0_i32 = arith.constant 0 : i32
    %c0_i32_0 = arith.constant 0 : i32
    return %c0_i32, %arg0 : i32, i32
  }
  func.func @transform_3(%arg0: i32, %arg1: i32, %arg2: i32) -> (i32, i32) {
    %c0_i32 = arith.constant 0 : i32
    return %arg1, %arg0 : i32, i32
  }
}

</mosaic_0001>

<bundles_post_ra>
// kernel: bert_decoder_forward.8
= control target key start
LH: loop header
LB: loop body
LE: loop exit
PB: predicated region body
PF: predicated region fallthrough
CT: control target
= control target key end

     0   :  { %vm21_vm0 = vcmask 261120   ;;  %s136_s0 = inlined_call_operand.vmem [shape: f32[16,32], index: 0, kind: input, shape index: {}]   ;;  %s137_s2 = inlined_call_operand.vmem [shape: f32[1,32], index: 2, kind: input, shape index: {}]   ;;  %s138_s3 = inlined_call_operand.vmem [shape: f32[1,32], index: 3, kind: input, shape index: {}]   ;;  %s139_s1 = inlined_call_operand.vmem [shape: f32[16,32], index: 1, kind: input, shape index: {}]   ;;  %s140_s4 = inlined_call_operand.vmem [shape: f32[16,32], index: 4, kind: output, shape index: {}]  }
   0x1   :  { %v17_v0 = vld [vmem:[%s136_s0] sm:$0xff]  ;;  %v18_v1 = vld [vmem:[%s136_s0 + $0x8] sm:$0xff] }
   0x2   :  { %v22_v2 = vsel %vm21_vm0, %v17_v0, 0.0  ;;  %v25_v3 = vsel %vm21_vm0, %v18_v1, 0.0  ;;  %v75_v21 = vld [vmem:[%s137_s2] ss:$0 sm:$0xff]  ;;  %v66_v31 = vld [vmem:[%s139_s1 + $0x8] sm:$0xff] }
   0x3   :  { %23 = vadd.xlane.f32.xlu0 %v22_v2  ;;  %v76_v23 = vld [vmem:[%s138_s3] ss:$0 sm:$0xff] }
   0x4   :  { %v65_v26 = vld [vmem:[%s139_s1] sm:$0xff] }
   0x7   :  { %26 = vadd.xlane.f32.xlu0 %v25_v3 }
  0x90   :  { %v24_v4 = vpop.xlane.xlu0 %23 }
  0x91   :  { %v29_v5 = vmul.f32 0.03125, %v24_v4 }
  0x93   :  { %v31_v6 = vsub.f32 %v17_v0, %v29_v5 }
  0x94   :  { %v27_v7 = vpop.xlane.xlu0 %26 }
  0x95   :  { %v30_v8 = vmul.f32 0.03125, %v27_v7  ;;  %v33_v9 = vmul.f32 %v31_v6, %v31_v6 }
  0x97   :  { %v32_v10 = vsub.f32 %v18_v1, %v30_v8  ;;  %v35_v11 = vsel %vm21_vm0, %v33_v9, 0.0 }
  0x98   :  { %36 = vadd.xlane.f32.xlu1 %v35_v11 }
  0x99   :  { %v34_v12 = vmul.f32 %v32_v10, %v32_v10 }
  0x9b   :  { %v38_v13 = vsel %vm21_vm0, %v34_v12, 0.0 }
  0x9c   :  { %39 = vadd.xlane.f32.xlu1 %v38_v13 }
 0x125   :  { %v37_v14 = vpop.xlane.xlu1 %36 }
 0x126   :  { %v41_v15 = vmul.f32 0.03125, %v37_v14 }
 0x128   :  { %v43_v16 = vadd.f32 1e-12, %v41_v15 }
 0x129   :  { %v40_v17 = vpop.xlane.xlu1 %39 }
 0x12a   :  { %77 = vrsqrt.f32 %v43_v16  ;;  %v42_v18 = vmul.f32 0.03125, %v40_v17 }
 0x12c   :  { %v44_v19 = vadd.f32 1e-12, %v42_v18 }
 0x12e   :  { %79 = vrsqrt.f32 %v44_v19 }
 0x134   :  { %v78_v20 = vpop.eup %77 }
 0x135   :  { %v47_v22 = vmul.f32 %v78_v20, %v31_v6 }
 0x137   :  { %v55_v24 = vmul.f32 %v75_v21, %v47_v22 }
 0x138   :  { %v80_v25 = vpop.eup %79 }
 0x139   :  { %v63_v27 = vadd.f32 %v76_v23, %v55_v24  ;;  %v48_v28 = vmul.f32 %v80_v25, %v32_v10 }
 0x13b   :  { %v67_v29 = vadd.f32 %v65_v26, %v63_v27  ;;  %v56_v30 = vmul.f32 %v75_v21, %v48_v28 }
 0x13d   :  { %69 = vst.msk [vmem:[%s140_s4] sm:$0xff] %vm21_vm0, %v67_v29  ;;  %v64_v32 = vadd.f32 %v76_v23, %v56_v30 }
 0x13f   :  { %v68_v33 = vadd.f32 %v66_v31, %v64_v32 }
 0x141   :  { %70 = vst.msk [vmem:[%s140_s4 + $0x8] sm:$0xff] %vm21_vm0, %v68_v33 }

// kernel: bert_decoder_forward.11
= control target key start
LH: loop header
LB: loop body
LE: loop exit
PB: predicated region body
PF: predicated region fallthrough
CT: control target
= control target key end

     0   :  { %v310_v0 = vmov 0.0   ;;  %vm311_vm0 = vmmov 0   ;;  %vm56_vm1 = vcmask 261120   ;;  %vm143_vm2 = vcmask 523264   ;;  %s413_s2 = inlined_call_operand.vmem [shape: bf16[32,64], index: 2, kind: input, shape index: {}]   ;;  %s414_s0 = inlined_call_operand.vmem [shape: f32[16,32], index: 0, kind: input, shape index: {}]   ;;  %s415_s4 = inlined_call_operand.vmem [shape: bf16[64,32], index: 4, kind: input, shape index: {}]   ;;  %s416_s3 = inlined_call_operand.vmem [shape: f32[1,64], index: 3, kind: input, shape index: {}]   ;;  %s417_s5 = inlined_call_operand.vmem [shape: f32[1,32], index: 5, kind: input, shape index: {}]   ;;  %s418_s1 = inlined_call_operand.vmem [shape: f32[16,1], index: 1, kind: input, shape index: {}]   ;;  %s419_s6 = inlined_call_operand.vmem [shape: f32[1,32], index: 6, kind: input, shape index: {}]   ;;  %s420_s7 = inlined_call_operand.vmem [shape: f32[1,32], index: 7, kind: input, shape index: {}]   ;;  %s421_s8 = inlined_call_operand.vmem [shape: f32[16,32], index: 8, kind: output, shape index: {}]  }
   0x1   :  { %275 = vmatprep.subr.bf16.mxu0 %v310_v0  ;;  %v300_v1 = vld [vmem:[%s413_s2] sm:$0xff]   ;;  %279 = vmatprep.mubr.msk.bf16.mxu0 %vm311_vm0, %v310_v0  ;;  %v301_v2 = vld [vmem:[%s413_s2 + $0x8] sm:$0xff]   ;;  %v304_v8 = vld [vmem:[%s415_s4 + $0x10] sm:$0xff]   ;;  %v312_v31 = vmov 0  }
   0x2   :  { %283 = vmatprep.subr.bf16.mxu1 %v310_v0  ;;  %291 = vmatprep.mubr.msk.bf16.mxu1 %vm311_vm0, %v310_v0  ;;  %v30_v3 = vld [vmem:[%s414_s0] sm:$0xff]  ;;  %v31_v4 = vld [vmem:[%s414_s0 + $0x8] sm:$0xff]  ;;  %v305_v9 = vld [vmem:[%s415_s4 + $0x18] sm:$0xff]  }
   0x3   :  { %276 = vmatpush3.bf16.msra.mxu0 %v300_v1  ;;  %v302_v5 = vld [vmem:[%s415_s4] sm:$0xff]   ;;  %v303_v6 = vld [vmem:[%s415_s4 + $0x8] sm:$0xff]   ;;  %v36_v7 = vpack.c.bf16 %v31_v4, %v30_v3  ;;  %298 = vset.pattern.permute.xlu0 %v312_v31 }
   0x4   :  { %277 = vmatprep.subr.bf16.mxu0 %v310_v0  ;;  %284 = vmatpush3.bf16.msra.mxu1 %v302_v5  ;;  %v255_v10 = vld [vmem:[%s416_s3] ss:$0 sm:$0xff]  ;;  %v236_v43 = vld [vmem:[%s418_s1 + $0x8] sm:$0xff] }
   0x5   :  { %285 = vmatprep.subr.bf16.mxu1 %v310_v0  ;;  %v259_v20 = vld [vmem:[%s417_s5] ss:$0 sm:$0xff]  ;;  %299 = vset.pattern.permute.xlu1 %v312_v31 }
   0x6   :  { %v235_v32 = vld [vmem:[%s418_s1] sm:$0xff] }
   0x7   :  { %278 = vmatpush3.bf16.msra.mxu0 %v301_v2  ;;  %v265_v51 = vld [vmem:[%s419_s6] ss:$0 sm:$0xff] }
   0x8   :  { %286 = vmatpush3.bf16.msra.mxu1 %v303_v6  ;;  %v266_v53 = vld [vmem:[%s420_s7] ss:$0 sm:$0xff] }
   0x9   :  { %287 = vmatprep.subr.bf16.mxu1 %v310_v0 }
   0xa   :  { %280 = vmatmul.mubr.msk.bf16.vlgmr.msra.gmra.mrb[0].mxu0 %vm56_vm1, %v36_v7 }
   0xc   :  { %288 = vmatpush3.bf16.msra.mxu1 %v304_v8 }
   0xd   :  { %289 = vmatprep.subr.bf16.mxu1 %v310_v0 }
  0x10   :  { %290 = vmatpush3.bf16.msra.mxu1 %v305_v9 }
  0xdd   :  { %v94_v11 = vpop.f32.mrb[0].mxu0 }
  0xde   :  { %v95_v12 = vadd.f32 %v255_v10, %v94_v11  ;;  %v281_v13 = vpop.f32.mrb[1].mxu0 }
  0xdf   :  { %v97_v14 = vpop.f32.mrb[2].mxu0 }
  0xe0   :  { %v98_v15 = vadd.f32 %v255_v10, %v97_v14  ;;  %v282_v16 = vpop.f32.mrb[3].mxu0  ;;  %v101_v17 = vmax.f32 %v95_v12, 0.0 }
  0xe2   :  { %v102_v18 = vmax.f32 %v98_v15, 0.0 }
  0xe4   :  { %v111_v19 = vpack.c.bf16 %v102_v18, %v101_v17 }
  0xe6   :  { %292 = vmatmul.mubr.msk.bf16.vlgmr.msra.gmra.mrb[0].mxu1 %vm143_vm2, %v111_v19 }
 0x1b9   :  { %v181_v21 = vpop.f32.mrb[0].mxu1 }
 0x1ba   :  { %v182_v22 = vadd.f32 %v259_v20, %v181_v21  ;;  %v293_v23 = vpop.f32.mrb[1].mxu1 }
 0x1bb   :  { %v184_v24 = vpop.f32.mrb[2].mxu1 }
 0x1bc   :  { %v185_v25 = vadd.f32 %v259_v20, %v184_v24  ;;  %v294_v26 = vpop.f32.mrb[3].mxu1  ;;  %v188_v27 = vadd.f32 %v182_v22, %v30_v3 }
 0x1be   :  { %v192_v28 = vsel %vm56_vm1, %v188_v27, 0.0  ;;  %v189_v29 = vadd.f32 %v185_v25, %v31_v4 }
 0x1bf   :  { %193 = vadd.xlane.f32.xlu0 %v192_v28 }
 0x1c0   :  { %v195_v30 = vsel %vm56_vm1, %v189_v29, 0.0 }
 0x1c3   :  { %196 = vadd.xlane.f32.xlu0 %v195_v30 }
 0x1d9   :  { %239 = vperm.xlu0 %298, %v235_v32  }
 0x24c   :  { %v194_v33 = vpop.xlane.xlu0 %193 }
 0x24d   :  { %v199_v34 = vmul.f32 0.03125, %v194_v33 }
 0x24f   :  { %v201_v35 = vsub.f32 %v188_v27, %v199_v34 }
 0x250   :  { %v197_v36 = vpop.xlane.xlu0 %196 }
 0x251   :  { %v200_v37 = vmul.f32 0.03125, %v197_v36  ;;  %v203_v38 = vmul.f32 %v201_v35, %v201_v35 }
 0x253   :  { %v202_v39 = vsub.f32 %v189_v29, %v200_v37  ;;  %v205_v40 = vsel %vm56_vm1, %v203_v38, 0.0 }
 0x254   :  { %206 = vadd.xlane.f32.xlu1 %v205_v40 }
 0x255   :  { %v204_v41 = vmul.f32 %v202_v39, %v202_v39 }
 0x257   :  { %v208_v42 = vsel %vm56_vm1, %v204_v41, 0.0 }
 0x258   :  { %209 = vadd.xlane.f32.xlu1 %v208_v42  ;;  %v240_v56 = vpop.permute.xlu0 %239 }
 0x269   :  { %244 = vperm.xlu1 %299, %v236_v43  }
 0x2e1   :  { %v207_v44 = vpop.xlane.xlu1 %206 }
 0x2e2   :  { %v211_v45 = vmul.f32 0.03125, %v207_v44 }
 0x2e4   :  { %v213_v46 = vadd.f32 1e-05, %v211_v45 }
 0x2e5   :  { %v210_v47 = vpop.xlane.xlu1 %209 }
 0x2e6   :  { %306 = vrsqrt.f32 %v213_v46  ;;  %v212_v48 = vmul.f32 0.03125, %v210_v47 }
 0x2e8   :  { %v214_v49 = vadd.f32 1e-05, %v212_v48 }
 0x2e9   :  { %v245_v61 = vpop.permute.xlu1 %244 }
 0x2ea   :  { %308 = vrsqrt.f32 %v214_v49 }
 0x2f0   :  { %v307_v50 = vpop.eup %306 }
 0x2f1   :  { %v217_v52 = vmul.f32 %v307_v50, %v201_v35 }
 0x2f3   :  { %v225_v54 = vmul.f32 %v265_v51, %v217_v52 }
 0x2f4   :  { %v309_v55 = vpop.eup %308 }
 0x2f5   :  { %v233_v57 = vadd.f32 %v266_v53, %v225_v54  ;;  %v218_v58 = vmul.f32 %v309_v55, %v202_v39 }
 0x2f7   :  { %v247_v59 = vmul.f32 %v240_v56, %v233_v57  ;;  %v226_v60 = vmul.f32 %v265_v51, %v218_v58 }
 0x2f9   :  { %249 = vst.msk [vmem:[%s421_s8] sm:$0xff] %vm56_vm1, %v247_v59  ;;  %v234_v62 = vadd.f32 %v266_v53, %v226_v60 }
 0x2fb   :  { %v248_v63 = vmul.f32 %v245_v61, %v234_v62 }
 0x2fd   :  { %250 = vst.msk [vmem:[%s421_s8 + $0x8] sm:$0xff] %vm56_vm1, %v248_v63 }

// kernel: bert_decoder_forward.9
= control target key start
LH: loop header
LB: loop body
LE: loop exit
PB: predicated region body
PF: predicated region fallthrough
CT: control target
= control target key end

     0   :  { %s1649_s21 = smov 0   ;;  %s1651_s22 = smov 0   ;;  %s1918_s0 = inlined_call_operand.vmem [shape: f32[2,8,32], index: 0, kind: input, shape index: {}]   ;;  %s1919_s1 = inlined_call_operand.vmem [shape: f32[2,128,32], index: 1, kind: input, shape index: {}]   ;;  %s1920_s2 = inlined_call_operand.vmem [shape: f32[2,1,128], index: 2, kind: input, shape index: {}]   ;;  %s1921_s3 = inlined_call_operand.vmem [shape: f32[2,8,1], index: 3, kind: input, shape index: {}]   ;;  %s1922_s4 = inlined_call_operand.vmem [shape: bf16[32,32], index: 4, kind: input, shape index: {}]   ;;  %s1923_s5 = inlined_call_operand.vmem [shape: f32[1,32], index: 5, kind: input, shape index: {}]   ;;  %s1924_s6 = inlined_call_operand.vmem [shape: bf16[32,64], index: 6, kind: input, shape index: {}]   ;;  %s1925_s7 = inlined_call_operand.vmem [shape: f32[1,64], index: 7, kind: input, shape index: {}]   ;;  %s1926_s8 = inlined_call_operand.vmem [shape: bf16[32,32], index: 8, kind: input, shape index: {}]   ;;  %s1927_s9 = inlined_call_operand.vmem [shape: f32[1,32], index: 9, kind: input, shape index: {}]   ;;  %s1928_s10 = inlined_call_operand.vmem [shape: f32[1,32], index: 10, kind: input, shape index: {}]   ;;  %s1929_s11 = inlined_call_operand.vmem [shape: f32[1,32], index: 11, kind: input, shape index: {}]   ;;  %s1930_s12 = inlined_call_operand.vmem [shape: f32[2,8,32], index: 12, kind: output, shape index: {}]  }
   0x1   :  { %s1653_s23 = smov 0  }
   0x2 LB: > { %s34_s24 = sadd.s32 1, %s1571_s22  ;;  %p1305_p0 = scmp.ge.s32.totalorder %s1575_s23, 1  ;;  %s1575_s23 = sphi %s1653_s23, %s22_s23   ;;  %s1571_s22 = sphi %s1651_s22, %s1934_s22   ;;  %s1567_s21 = sphi %s1649_s21, %s1933_s21  }
   0x3   : > { %p36_p1 = scmp.ge.s32.totalorder %s34_s24, 2  ;;  %p412_p2 = scmp.lt.s32.totalorder %s1575_s23, 3 }
   0x5   : > { %s1936_s24 = smov (%p36_p1, %s34_s24), 0  ;;  %p413_p3 = pnand %p1305_p0, %p412_p2 }
   0x6   : > { %v1537_v0 = vld [vmem:[%s1924_s6] sm:$0xff] (!%p413_p3)   ;;  %p473_p4 = scmp.lt.s32.totalorder (!%p413_p3), %s1567_s21, 1  ;;  %v1538_v1 = vld [vmem:[%s1924_s6 + $0x8] sm:$0xff] (!%p413_p3)   ;;  %v1577_v2 = vmov (!%p413_p3), 0.0   ;;  %vm1578_vm0 = vmmov (!%p413_p3), 0   ;;  %vm544_vm1 = vcmask (!%p413_p3), 261120  }
   0x7   : > { %416 = sbr.rel (%p413_p3) target bundleno = 2289 (0x8f1), region = 68  ;;  %1397 = vmatprep.subr.bf16.mxu1 (!%p413_p3), %v1537_v0  ;;  %1389 = vmatprep.subr.bf16.mxu0 (!%p413_p3), %v1577_v2  ;;  %v1539_v3 = vld [vmem:[%s1922_s4] sm:$0xff] (!%p413_p3)   ;;  %v1540_v4 = vld [vmem:[%s1922_s4 + $0x8] sm:$0xff] (!%p413_p3)   ;;  %vm766_vm2 = vcmask (!%p413_p3), 130048   ;;  %s1579_s29 = smov (!%p413_p3), 96  }
   0x8   : > { %1398 = vmatpush3.bf16.msra.mxu1 (!%p413_p3), %v1537_v0  ;;  %1393 = vmatprep.mubr.msk.bf16.mxu0 (!%p413_p3), %vm1578_vm0, %v1577_v2  ;;  %v1315_v32 = vld [vmem:[%s1925_s7] ss:$0 sm:$0xff] (!%p413_p3)  ;;  %s1582_s18 = smov (!%p413_p3), 80   ;;  %s1583_s27 = smov (!%p413_p3), 16  }
   0x9   : > { %1399 = vmatprep.subr.bf16.mxu1 (!%p413_p3), %v1538_v1  ;;  %1390 = vmatpush3.bf16.msra.mxu0 (!%p413_p3), %v1539_v3 }
   0xa   : > { %1391 = vmatprep.subr.bf16.mxu0 (!%p413_p3), %v1577_v2 }
   0xc   : > { %1400 = vmatpush3.bf16.msra.mxu1 (!%p413_p3), %v1538_v1 }
   0xd   : > { %1437 = vmatprep.subr.bf16.mxu1 (!%p413_p3), %v1577_v2  ;;  %1392 = vmatpush3.bf16.msra.mxu0 (!%p413_p3), %v1540_v4 }
   0xe   : > { %s1938_s21 = smov (!%p473_p4, %s1567_s21), 1  ;;  %1417 = vmatprep.subr.bf16.mxu0 %v1577_v2 }
   0xf   : > { %s1336_s13 = sshll.u32 %s1938_s21, 7  ;;  %s1686_s16 = sshll.u32 %s1938_s21, 3 }
  0x10   : > { %s1691_s19 = scalar_lea.vmem %s1919_s1, %s1336_s13  ;;  %s479_s26 = scalar_lea.vmem %s1918_s0, %s1686_s16 }
  0x11   : > { %v504_v5 = vld [vmem:[%s1691_s19] sm:$0xff]  ;;  %v505_v6 = vld [vmem:[%s1691_s19 + $0x8] sm:$0xff]  ;;  %v506_v7 = vld [vmem:[%s1691_s19 + $0x10] sm:$0xff]  ;;  %s487_s17 = scalar_lea.vmem %s1920_s2, %s1938_s21  ;;  %s1581_s21 = smov 112  }
  0x12   : > { %v593_v8 = vpack.c.bf16 %v505_v6, %v504_v5  ;;  %v507_v9 = vld [vmem:[%s1691_s19 + $0x18] sm:$0xff]  ;;  %v508_v10 = vld [vmem:[%s1691_s19 + $0x20] sm:$0xff]  ;;  %v509_v11 = vld [vmem:[%s1691_s19 + $0x28] sm:$0xff]  ;;  %s494_s14 = scalar_lea.vmem %s1921_s3, %s1686_s16  ;;  %s501_s25 = scalar_lea.vmem %s1930_s12, %s1686_s16 }
  0x13   : > { %v594_v12 = vpack.c.bf16 %v507_v9, %v506_v7  ;;  %v595_v13 = vpack.c.bf16 %v509_v11, %v508_v10  ;;  %v510_v14 = vld [vmem:[%s1691_s19 + $0x30] sm:$0xff]  ;;  %v511_v15 = vld [vmem:[%s1691_s19 + $0x38] sm:$0xff]  ;;  %v1711_v16 = vld [vmem:[%s479_s26] sm:$0xff] }
  0x14   : > { %1401 = vmatprep.mubr.msk.bf16.mxu1 %vm544_vm1, %v593_v8  ;;  %v512_v17 = vld [vmem:[%s1691_s19 + $0x40] sm:$0xff]  ;;  %v513_v18 = vld [vmem:[%s1691_s19 + $0x48] sm:$0xff]  ;;  %v524_v19 = vpack.c.bf16 %v1711_v16, %v1711_v16  ;;  %v596_v20 = vpack.c.bf16 %v511_v15, %v510_v14  ;;  %v514_v22 = vld [vmem:[%s1691_s19 + $0x50] sm:$0xff] }
  0x15   : > { %1402 = vmatmul.mubr.msk.bf16.vlgmr.msra.gmra.mrb[0].mxu1 %vm544_vm1, %v594_v12  ;;  %v597_v21 = vpack.c.bf16 %v513_v18, %v512_v17  ;;  %v515_v23 = vld [vmem:[%s1691_s19 + $0x58] sm:$0xff]  ;;  %v516_v24 = vld [vmem:[%s1691_s19 + $0x60] sm:$0xff]  ;;  %v517_v25 = vld [vmem:[%s1691_s19 + $0x68] sm:$0xff] }
  0x16   : > { %1405 = vmatprep.mubr.msk.bf16.mxu1 %vm544_vm1, %v595_v13  ;;  %1394 = vmatmul.mubr.msk.bf16.vlgmr.msra.gmra.mrb[0].mxu0 %vm544_vm1, %v524_v19  ;;  %v598_v26 = vpack.c.bf16 %v515_v23, %v514_v22  ;;  %v599_v27 = vpack.c.bf16 %v517_v25, %v516_v24  ;;  %v518_v28 = vld [vmem:[%s1691_s19 + $0x70] sm:$0xff]  ;;  %v519_v29 = vld [vmem:[%s1691_s19 + $0x78] sm:$0xff]  ;;  %v1580_v25 = vmov 0  }
  0x17   : > { %1433 = vmatprep.mubr.msk.bf16.mxu0 %vm1578_vm0, %v1577_v2  ;;  %v600_v30 = vpack.c.bf16 %v519_v29, %v518_v28  ;;  %1536 = vset.pattern.permute.xlu0 %v1580_v25 }
  0x1d   : > { %1406 = vmatmul.mubr.msk.bf16.gmra.mrb[4].mxu1 %vm544_vm1, %v596_v20 }
  0x1e   : > { %1409 = vmatprep.mubr.msk.bf16.mxu1 %vm544_vm1, %v597_v21  ;;  %v1311_v21 = vld [vmem:[%s1923_s5] ss:$0 sm:$0xff] }
  0x25   : > { %1410 = vmatmul.mubr.msk.bf16.gmra.mrb[8].mxu1 %vm544_vm1, %v598_v26  ;;  %v752_v26 = vlaneseq }
  0x26   : > { %1413 = vmatprep.mubr.msk.bf16.mxu1 %vm544_vm1, %v599_v27  ;;  %v749_v27 = vld [vmem:[%s487_s17] sm:$0x1] }
  0x27   : > { %v753_v28 = vshrl.u32 %v752_v26, 7  ;;  %vm750_vm3 = vcmp.gt.f32.partialorder %v749_v27, 0.5 }
  0x29   : > { %v762_v29 = vsub.s32 0, %v753_v28 }
  0x2d   : > { %1414 = vmatmul.mubr.msk.bf16.gmra.mrb[12].mxu1 %vm544_vm1, %v600_v30  ;;  %v759_v30 = vsel %vm750_vm3, 1, %v1580_v25 }
  0x2e   : > { %1453 = vmatprep.mubr.msk.bf16.mxu1 %vm1578_vm0, %v1577_v2 }
  0xe8   : > { %v1403_v31 = vpop.f32.mrb[0].mxu1 }
  0xe9   : > { %v678_v33 = vpop.f32.mrb[1].mxu1  ;;  %v687_v35 = vadd.f32 %v1403_v31, %v1315_v32  ;;  %v582_v40 = vpop.f32.mrb[0].mxu0  ;;  %v757_v31 = vand.u32 127, %v752_v26 }
  0xea   : > { %v1404_v34 = vpop.f32.mrb[2].mxu1  ;;  %v679_v38 = vadd.f32 %v1315_v32, %v678_v33  ;;  %v1395_v42 = vpop.f32.mrb[1].mxu0  ;;  %v583_v22 = vadd.f32 %v1311_v21, %v582_v40 }
  0xeb   : > { %v690_v36 = vadd.f32 %v1404_v34, %v1315_v32  ;;  %v681_v37 = vpop.f32.mrb[3].mxu1  ;;  %v585_v44 = vpop.f32.mrb[2].mxu0  ;;  %vm758_vm4 = vcmp.gt.s32.totalorder %v757_v31, %v753_v28 }
  0xec   : > { %v682_v39 = vadd.f32 %v1315_v32, %v681_v37  ;;  %v1396_v45 = vpop.f32.mrb[3].mxu0  ;;  %v588_v24 = vpack.c.bf16 %v583_v22, %v583_v22 }
  0xed   : > { %v1736_v41 = vpack.c.bf16 %v690_v36, %v687_v35 }
  0xee   : > { %v1738_v43 = vpack.c.bf16 %v682_v39, %v679_v38 }
  0xef   : > { %856 = vrot.lane.b32.xlu1 %v1736_v41, %s1579_s29  ;;  %v774_v57 = vsel %vm766_vm2, %v1736_v41, 0 }
  0xf0   : > { %v771_v46 = vsel %vm766_vm2, %v1738_v43, 0  ;;  %v1407_v47 = vpop.f32.mrb[4].mxu1 }
  0xf1   : > { %1418 = vmatpush3.bf16.xpose.msra.mxu0 %v771_v46  ;;  %v703_v48 = vadd.f32 %v1407_v47, %v1315_v32  ;;  %v694_v49 = vpop.f32.mrb[5].mxu1 }
  0xf2   : > { %v695_v50 = vadd.f32 %v1315_v32, %v694_v49  ;;  %v1408_v51 = vpop.f32.mrb[6].mxu1  ;;  %1419 = vmatprep.subr.bf16.mxu0 %v1577_v2 }
  0xf3   : > { %v706_v52 = vadd.f32 %v1408_v51, %v1315_v32  ;;  %v697_v53 = vpop.f32.mrb[7].mxu1 }
  0xf4   : > { %v698_v54 = vadd.f32 %v1315_v32, %v697_v53 }
  0xf5   : > { %v1745_v55 = vpack.c.bf16 %v706_v52, %v703_v48 }
  0xf6   : > { %v1747_v56 = vpack.c.bf16 %v698_v54, %v695_v50 }
  0xf7   : > { %v780_v17 = vsel %vm766_vm2, %v1745_v55, 0 }
  0xf8   : > { %v1411_v58 = vpop.f32.mrb[8].mxu1  ;;  %v777_v5 = vsel %vm766_vm2, %v1747_v56, 0 }
  0xf9   : > { %1420 = vmatpush3.bf16.xpose.msra.mxu0 %v774_v57  ;;  %v719_v59 = vadd.f32 %v1411_v58, %v1315_v32  ;;  %v710_v60 = vpop.f32.mrb[9].mxu1 }
  0xfa   : > { %1421 = vmatprep.subr.bf16.mxu0 %v1577_v2  ;;  %v711_v61 = vadd.f32 %v1315_v32, %v710_v60  ;;  %v1412_v62 = vpop.f32.mrb[10].mxu1 }
  0xfb   : > { %v722_v63 = vadd.f32 %v1412_v62, %v1315_v32  ;;  %v713_v0 = vpop.f32.mrb[11].mxu1 }
  0xfc   : > { %v714_v1 = vadd.f32 %v1315_v32, %v713_v0 }
  0xfd   : > { %v1752_v3 = vpack.c.bf16 %v722_v63, %v719_v59 }
  0xfe   : > { %v1754_v4 = vpack.c.bf16 %v714_v1, %v711_v61 }
  0xff   : > { %v786_v19 = vsel %vm766_vm2, %v1752_v3, 0 }
 0x100   : > { %v1415_v6 = vpop.f32.mrb[12].mxu1  ;;  %v783_v18 = vsel %vm766_vm2, %v1754_v4, 0 }
 0x101   : > { %1422 = vmatpush3.bf16.xpose.msra.mxu0 %v777_v5  ;;  %v735_v7 = vadd.f32 %v1415_v6, %v1315_v32  ;;  %v726_v8 = vpop.f32.mrb[13].mxu1 }
 0x102   : > { %1423 = vmatprep.subr.bf16.mxu0 %v1577_v2  ;;  %v727_v9 = vadd.f32 %v1315_v32, %v726_v8  ;;  %v1416_v10 = vpop.f32.mrb[14].mxu1 }
 0x103   : > { %v738_v11 = vadd.f32 %v1416_v10, %v1315_v32  ;;  %v729_v12 = vpop.f32.mrb[15].mxu1 }
 0x104   : > { %v730_v13 = vadd.f32 %v1315_v32, %v729_v12  ;;  %v763_v32 = vrot.slane %v759_v30, %v762_v29 }
 0x105   : > { %v1759_v14 = vpack.c.bf16 %v738_v11, %v735_v7 }
 0x106   : > { %v1761_v15 = vpack.c.bf16 %v730_v13, %v727_v9  ;;  %vm764_vm5 = vcmp.eq.s32.totalorder %v763_v32, 1 }
 0x107   : > { %v792_v23 = vsel %vm766_vm2, %v1759_v14, 0  ;;  %vm1788_vm6 = vmor %vm764_vm5, %vm758_vm4 }
 0x108   : > { %v789_v20 = vsel %vm766_vm2, %v1761_v15, 0 }
 0x109   : > { %1424 = vmatpush3.bf16.xpose.msra.mxu0 %v780_v17 }
 0x10a   : > { %1425 = vmatprep.subr.bf16.mxu0 %v1577_v2 }
 0x111   : > { %1426 = vmatpush3.bf16.xpose.msra.mxu0 %v783_v18 }
 0x112   : > { %1427 = vmatprep.subr.bf16.mxu0 %v1577_v2 }
 0x119   : > { %1428 = vmatpush3.bf16.xpose.msra.mxu0 %v786_v19 }
 0x11a   : > { %1429 = vmatprep.subr.bf16.mxu0 %v1577_v2 }
 0x121   : > { %1430 = vmatpush3.bf16.xpose.msra.mxu0 %v789_v20 }
 0x122   : > { %1431 = vmatprep.subr.bf16.mxu0 %v1577_v2 }
 0x129   : > { %1432 = vmatpush3.bf16.xpose.msra.mxu0 %v792_v23 }
 0x12a   : > { %1477 = vmatprep.subr.bf16.mxu0 %v1577_v2 }
 0x130   : > { %1434 = vmatmul.mubr.msk.bf16.vlgmr.msra.gmra.mrb[4].mxu0 %vm766_vm2, %v588_v24 }
 0x131   : > { %1493 = vmatprep.mubr.msk.bf16.mxu0 %vm1578_vm0, %v1577_v2 }
 0x161   : > { %v857_v46 = vpop.permute.xlu1 %856 }
 0x203   : > { %v828_v33 = vpop.f32.mrb[4].mxu0 }
 0x204   : > { %v834_v35 = vmul.f32 0.25, %v828_v33  ;;  %v1435_v36 = vpop.f32.mrb[5].mxu0 }
 0x205   : > { %v831_v37 = vpop.f32.mrb[6].mxu0 }
 0x206   : > { %v1436_v38 = vpop.f32.mrb[7].mxu0  ;;  %v835_v39 = vsel %vm1788_vm6, -1e+09, %v834_v35 }
 0x207   : > { %836 = vmax.xlane.f32.xlu0 %v835_v39  ;;  %v1541_v38 = vld [vmem:[%s1926_s8] sm:$0xff]  }
 0x21d   : > { %854 = vrot.lane.b32.xlu0 %v1738_v43, %s1579_s29 }
 0x221   : > { %858 = vrot.lane.b32.xlu0 %v1747_v56, %s1579_s29 }
 0x225   : > { %860 = vrot.lane.b32.xlu0 %v1745_v55, %s1579_s29 }
 0x229   : > { %862 = vrot.lane.b32.xlu0 %v1754_v4, %s1579_s29 }
 0x22d   : > { %864 = vrot.lane.b32.xlu0 %v1752_v3, %s1579_s29 }
 0x231   : > { %868 = vrot.lane.b32.xlu0 %v1759_v14, %s1579_s29 }
 0x235   : > { %921 = vrot.lane.b32.xlu0 %v1738_v43, %s1581_s21 }
 0x239   : > { %923 = vrot.lane.b32.xlu0 %v1736_v41, %s1581_s21 }
 0x23d   : > { %925 = vrot.lane.b32.xlu0 %v1747_v56, %s1581_s21 }
 0x241   : > { %929 = vrot.lane.b32.xlu0 %v1754_v4, %s1581_s21 }
 0x245   : > { %933 = vrot.lane.b32.xlu0 %v1761_v15, %s1581_s21 }
 0x249   : > { %919 = vrot.lane.b32.xlu0 %v588_v24, %s1581_s21 }
 0x24d   : > { %1016 = vrot.lane.b32.xlu0 %v1738_v43, %s1582_s18 }
 0x251   : > { %1018 = vrot.lane.b32.xlu0 %v1736_v41, %s1582_s18 }
 0x255   : > { %1026 = vrot.lane.b32.xlu0 %v1752_v3, %s1582_s18 }
 0x294   : > { %v837_v40 = vpop.xlane.xlu0 %836 }
 0x295   : > { %v838_v42 = vsub.f32 %v835_v39, %v837_v40 }
 0x297   : > { %v839_v44 = vmul.f32 1.442695, %v838_v42 }
 0x298   : > { %v855_v45 = vpop.permute.xlu0 %854 }
 0x299   : > { %1543 = vpow2.f32 %v839_v44  ;;  %1438 = vmatpush3.bf16.msra.mxu1 %v855_v45 }
 0x29a   : > { %1439 = vmatprep.subr.bf16.mxu1 %v1577_v2 }
 0x29c   : > { %v859_v47 = vpop.permute.xlu0 %858 }
 0x29d   : > { %1440 = vmatpush3.bf16.msra.mxu1 %v857_v46 }
 0x29e   : > { %1441 = vmatprep.subr.bf16.mxu1 %v1577_v2 }
 0x2a0   : > { %v861_v43 = vpop.permute.xlu0 %860 }
 0x2a1   : > { %1442 = vmatpush3.bf16.msra.mxu1 %v859_v47 }
 0x2a2   : > { %1443 = vmatprep.subr.bf16.mxu1 %v1577_v2 }
 0x2a3   : > { %v1544_v41 = vpop.eup %1543 }
 0x2a4   : > { %841 = vadd.xlane.f32.xlu1 %v1544_v41  ;;  %v863_v48 = vpop.permute.xlu0 %862 }
 0x2a5   : > { %1444 = vmatpush3.bf16.msra.mxu1 %v861_v43  ;;  %v1328_v43 = vld [vmem:[%s1927_s9] ss:$0 sm:$0xff] }
 0x2a6   : > { %1445 = vmatprep.subr.bf16.mxu1 %v1577_v2 }
 0x2a8   : > { %v865_v49 = vpop.permute.xlu0 %864 }
 0x2a9   : > { %1446 = vmatpush3.bf16.msra.mxu1 %v863_v48 }
 0x2aa   : > { %1447 = vmatprep.subr.bf16.mxu1 %v1577_v2 }
 0x2ac   : > { %v869_v50 = vpop.permute.xlu0 %868 }
 0x2ad   : > { %1448 = vmatpush3.bf16.msra.mxu1 %v865_v49 }
 0x2ae   : > { %1449 = vmatprep.subr.bf16.mxu1 %v1577_v2 }
 0x2b0   : > { %v922_v51 = vpop.permute.xlu0 %921 }
 0x2b4   : > { %v924_v52 = vpop.permute.xlu0 %923 }
 0x2b5   : > { %866 = vrot.lane.b32.xlu1 %v1761_v15, %s1579_s29  ;;  %v944_v5 = vsel %vm766_vm2, %v924_v52, 0 }
 0x2b8   : > { %v926_v53 = vpop.permute.xlu0 %925 }
 0x2b9   : > { %927 = vrot.lane.b32.xlu1 %v1745_v55, %s1581_s21  ;;  %v947_v6 = vsel %vm766_vm2, %v926_v53, 0  ;;  %v1183_v53 = vld [vmem:[%s494_s14] sm:$0xff] }
 0x2bc   : > { %v930_v54 = vpop.permute.xlu0 %929 }
 0x2bd   : > { %931 = vrot.lane.b32.xlu1 %v1752_v3, %s1581_s21  ;;  %v941_v3 = vsel %vm766_vm2, %v922_v51, 0  ;;  %v953_v9 = vsel %vm766_vm2, %v930_v54, 0 }
 0x2c0   : > { %v934_v57 = vpop.permute.xlu0 %933 }
 0x2c1   : > { %935 = vrot.lane.b32.xlu1 %v1759_v14, %s1581_s21  ;;  %v959_v12 = vsel %vm766_vm2, %v934_v57, 0 }
 0x2c4   : > { %v920_v58 = vpop.permute.xlu0 %919 }
 0x2c8   : > { %v1017_v59 = vpop.permute.xlu0 %1016 }
 0x2c9   : > { %1478 = vmatpush3.bf16.msra.mxu0 %v1017_v59 }
 0x2ca   : > { %1479 = vmatprep.subr.bf16.mxu0 %v1577_v2 }
 0x2cc   : > { %v1019_v60 = vpop.permute.xlu0 %1018 }
 0x2cd   : > { %1480 = vmatpush3.bf16.msra.mxu0 %v1019_v60 }
 0x2ce   : > { %1481 = vmatprep.subr.bf16.mxu0 %v1577_v2 }
 0x331   : > { %v842_v61 = vpop.xlane.xlu1 %841 }
 0x332   : > { %1545 = vrcp.f32 %v842_v61 }
 0x335   : > { %v867_v62 = vpop.permute.xlu1 %866 }
 0x336   : > { %1450 = vmatpush3.bf16.msra.mxu1 %v867_v62 }
 0x337   : > { %1451 = vmatprep.subr.bf16.mxu1 %v1577_v2 }
 0x339   : > { %v928_v7 = vpop.permute.xlu1 %927 }
 0x33a   : > { %1452 = vmatpush3.bf16.msra.mxu1 %v869_v50  ;;  %v950_v8 = vsel %vm766_vm2, %v928_v7, 0 }
 0x33b   : > { %1457 = vmatprep.subr.bf16.mxu1 %v1577_v2 }
 0x33c   : > { %v1546_v63 = vpop.eup %1545 }
 0x33d   : > { %v844_v0 = vmul.f32 %v1546_v63, %v1544_v41  ;;  %v932_v10 = vpop.permute.xlu1 %931 }
 0x33e   : > { %v956_v11 = vsel %vm766_vm2, %v932_v10, 0 }
 0x33f   : > { %v845_v1 = vpack.c.bf16 %v844_v0, %v844_v0  ;;  %v1332_v0 = vld [vmem:[%s1928_s10] ss:$0 sm:$0xff] }
 0x341   : > { %1454 = vmatmul.mubr.bf16.vlgmr.msra.gmra.mrb[16].mxu1 %v845_v1  ;;  %v936_v13 = vpop.permute.xlu1 %935 }
 0x342   : > { %1473 = vmatprep.mubr.msk.bf16.mxu1 %vm1578_vm0, %v1577_v2  ;;  %v962_v17 = vsel %vm766_vm2, %v936_v13, 0 }
 0x343   : > { %1458 = vmatpush3.bf16.xpose.msra.mxu1 %v941_v3  ;;  %v1333_v3 = vld [vmem:[%s1929_s11] ss:$0 sm:$0xff] }
 0x344   : > { %1459 = vmatprep.subr.bf16.mxu1 %v1577_v2 }
 0x34b   : > { %1460 = vmatpush3.bf16.xpose.msra.mxu1 %v944_v5 }
 0x34c   : > { %1461 = vmatprep.subr.bf16.mxu1 %v1577_v2 }
 0x353   : > { %1462 = vmatpush3.bf16.xpose.msra.mxu1 %v947_v6 }
 0x354   : > { %1463 = vmatprep.subr.bf16.mxu1 %v1577_v2 }
 0x35b   : > { %1464 = vmatpush3.bf16.xpose.msra.mxu1 %v950_v8 }
 0x35c   : > { %1465 = vmatprep.subr.bf16.mxu1 %v1577_v2 }
 0x363   : > { %1466 = vmatpush3.bf16.xpose.msra.mxu1 %v953_v9 }
 0x364   : > { %1467 = vmatprep.subr.bf16.mxu1 %v1577_v2 }
 0x36b   : > { %1468 = vmatpush3.bf16.xpose.msra.mxu1 %v956_v11 }
 0x36c   : > { %1469 = vmatprep.subr.bf16.mxu1 %v1577_v2 }
 0x373   : > { %1470 = vmatpush3.bf16.xpose.msra.mxu1 %v959_v12 }
 0x374   : > { %1471 = vmatprep.subr.bf16.mxu1 %v1577_v2 }
 0x37b   : > { %1472 = vmatpush3.bf16.xpose.msra.mxu1 %v962_v17 }
 0x382   : > { %1474 = vmatmul.mubr.msk.bf16.vlgmr.msra.gmra.mrb[20].mxu1 %vm766_vm2, %v920_v58 }
 0x414   : > { %v912_v18 = vpop.f32.mrb[16].mxu1 }
 0x415   : > { %v1455_v19 = vpop.f32.mrb[17].mxu1 }
 0x416   : > { %v915_v20 = vpop.f32.mrb[18].mxu1 }
 0x417   : > { %v1456_v21 = vpop.f32.mrb[19].mxu1 }
 0x455   : > { %v998_v22 = vpop.f32.mrb[20].mxu1 }
 0x456   : > { %v1004_v23 = vmul.f32 0.25, %v998_v22  ;;  %v1475_v24 = vpop.f32.mrb[21].mxu1 }
 0x457   : > { %v1001_v25 = vpop.f32.mrb[22].mxu1 }
 0x458   : > { %v1476_v26 = vpop.f32.mrb[23].mxu1  ;;  %v1005_v27 = vsel %vm1788_vm6, -1e+09, %v1004_v23 }
 0x459   : > { %1006 = vmax.xlane.f32.xlu1 %v1005_v27 }
 0x46a   : > { %1020 = vrot.lane.b32.xlu1 %v1747_v56, %s1582_s18 }
 0x46e   : > { %1022 = vrot.lane.b32.xlu1 %v1745_v55, %s1582_s18 }
 0x472   : > { %1024 = vrot.lane.b32.xlu1 %v1754_v4, %s1582_s18  ;;  %v1027_v4 = vpop.permute.xlu0 %1026 }
 0x476   : > { %1028 = vrot.lane.b32.xlu1 %v1761_v15, %s1582_s18 }
 0x4e6   : > { %v1007_v28 = vpop.xlane.xlu1 %1006 }
 0x4e7   : > { %v1008_v29 = vsub.f32 %v1005_v27, %v1007_v28 }
 0x4e9   : > { %v1009_v30 = vmul.f32 1.442695, %v1008_v29 }
 0x4ea   : > { %v1021_v31 = vpop.permute.xlu1 %1020 }
 0x4eb   : > { %1547 = vpow2.f32 %v1009_v30  ;;  %1482 = vmatpush3.bf16.msra.mxu0 %v1021_v31 }
 0x4ec   : > { %1483 = vmatprep.subr.bf16.mxu0 %v1577_v2 }
 0x4ee   : > { %v1023_v32 = vpop.permute.xlu1 %1022 }
 0x4ef   : > { %1484 = vmatpush3.bf16.msra.mxu0 %v1023_v32 }
 0x4f0   : > { %1485 = vmatprep.subr.bf16.mxu0 %v1577_v2 }
 0x4f2   : > { %v1025_v56 = vpop.permute.xlu1 %1024 }
 0x4f3   : > { %1486 = vmatpush3.bf16.msra.mxu0 %v1025_v56 }
 0x4f4   : > { %1487 = vmatprep.subr.bf16.mxu0 %v1577_v2 }
 0x4f5   : > { %v1548_v55 = vpop.eup %1547 }
 0x4f6   : > { %1011 = vadd.xlane.f32.xlu0 %v1548_v55  ;;  %v1029_v15 = vpop.permute.xlu1 %1028 }
 0x4f7   : > { %1488 = vmatpush3.bf16.msra.mxu0 %v1027_v4 }
 0x4f8   : > { %1489 = vmatprep.subr.bf16.mxu0 %v1577_v2 }
 0x4fb   : > { %1490 = vmatpush3.bf16.msra.mxu0 %v1029_v15 }
 0x4fc   : > { %1491 = vmatprep.subr.bf16.mxu0 %v1577_v2 }
 0x50c   : > { %1030 = vrot.lane.b32.xlu0 %v1759_v14, %s1582_s18  ;;  %v1542_v14 = vld [vmem:[%s1926_s8 + $0x8] sm:$0xff]  }
 0x583   : > { %v1012_v33 = vpop.xlane.xlu0 %1011 }
 0x584   : > { %1549 = vrcp.f32 %v1012_v33 }
 0x587   : > { %v1031_v34 = vpop.permute.xlu0 %1030 }
 0x588   : > { %1492 = vmatpush3.bf16.msra.mxu0 %v1031_v34 }
 0x589   : > { %1497 = vmatprep.subr.bf16.mxu0 %v1577_v2 }
 0x58e   : > { %v1550_v35 = vpop.eup %1549 }
 0x58f   : > { %v1014_v36 = vmul.f32 %v1550_v35, %v1548_v55 }
 0x591   : > { %v1015_v37 = vpack.c.bf16 %v1014_v36, %v1014_v36 }
 0x593   : > { %1494 = vmatmul.mubr.bf16.vlgmr.msra.gmra.mrb[8].mxu0 %v1015_v37 }
 0x594   : > { %1501 = vmatprep.mubr.msk.bf16.mxu0 %vm1578_vm0, %v1577_v2  ;;  %1498 = vmatpush3.bf16.msra.mxu0 %v1541_v38 }
 0x595   : > { %1499 = vmatprep.subr.bf16.mxu0 %v1577_v2 }
 0x598   : > { %1500 = vmatpush3.bf16.msra.mxu0 %v1542_v14 }
 0x666   : > { %v1074_v39 = vpop.f32.mrb[8].mxu0 }
 0x667   : > { %1081 = vrot.lane.b32.xlu1 %v1074_v39, %s1583_s27  ;;  %v1495_v40 = vpop.f32.mrb[9].mxu0 }
 0x668   : > { %v1077_v42 = vpop.f32.mrb[10].mxu0 }
 0x669   : > { %v1496_v44 = vpop.f32.mrb[11].mxu0 }
 0x6d9   : > { %v1082_v45 = vpop.permute.xlu1 %1081 }
 0x6da   : > { %v1084_v46 = vsel %vm766_vm2, %v912_v18, %v1082_v45 }
 0x6db   : > { %v1089_v47 = vpack.c.bf16 %v1084_v46, %v1084_v46 }
 0x6dd   : > { %1502 = vmatmul.mubr.msk.bf16.vlgmr.msra.gmra.mrb[12].mxu0 %vm544_vm1, %v1089_v47 }
 0x7b0   : > { %v1146_v41 = vpop.f32.mrb[12].mxu0 }
 0x7b1   : > { %v1147_v2 = vadd.f32 %v1328_v43, %v1146_v41  ;;  %v1503_v48 = vpop.f32.mrb[13].mxu0 }
 0x7b2   : > { %v1149_v49 = vpop.f32.mrb[14].mxu0 }
 0x7b3   : > { %v1504_v50 = vpop.f32.mrb[15].mxu0  ;;  %v1152_v51 = vadd.f32 %v1147_v2, %v1711_v16 }
 0x7b5   : > { %v1155_v52 = vsel %vm544_vm1, %v1152_v51, 0.0 }
 0x7b6   : > { %1156 = vadd.xlane.f32.xlu0 %v1155_v52 }
 0x7cc   : > { %1186 = vperm.xlu0 %1536, %v1183_v53  }
 0x843   : > { %v1157_v54 = vpop.xlane.xlu0 %1156 }
 0x844   : > { %v1159_v57 = vmul.f32 0.03125, %v1157_v54 }
 0x846   : > { %v1160_v58 = vsub.f32 %v1152_v51, %v1159_v57 }
 0x848   : > { %v1161_v59 = vmul.f32 %v1160_v58, %v1160_v58 }
 0x84a   : > { %v1162_v60 = vsel %vm544_vm1, %v1161_v59, 0.0 }
 0x84b   : > { %1163 = vadd.xlane.f32.xlu1 %v1162_v60  ;;  %v1187_v6 = vpop.permute.xlu0 %1186 }
 0x8d8   : > { %v1164_v61 = vpop.xlane.xlu1 %1163 }
 0x8d9   : > { %v1165_v62 = vmul.f32 0.03125, %v1164_v61 }
 0x8db   : > { %v1166_v16 = vadd.f32 1e-05, %v1165_v62 }
 0x8dd   : > { %1551 = vrsqrt.f32 %v1166_v16 }
 0x8e7   : > { %v1552_v63 = vpop.eup %1551 }
 0x8e8   : > { %v1168_v1 = vmul.f32 %v1552_v63, %v1160_v58 }
 0x8ea   : > { %v1175_v5 = vmul.f32 %v1332_v0, %v1168_v1 }
 0x8ec   : > { %v1182_v7 = vadd.f32 %v1333_v3, %v1175_v5 }
 0x8ee   : > { %v1189_v8 = vmul.f32 %v1187_v6, %v1182_v7 }
 0x8f0   : > { %1190 = vst.msk [vmem:[%s501_s25] sm:$0xff] %vm544_vm1, %v1189_v8 }
 0x8f1 PF: > { %s22_s23 = sadd.s32 1, %s1575_s23   ;;  %s1933_s21 = smov %s1571_s22 }
 0x8f2   : > { %p19_p5 = scmp.ge.s32.totalorder %s22_s23, 4   ;;  %s1934_s22 = smov %s1936_s24 }
 0x8f4   :  { %21 = sbr.rel (!%p19_p5) target bundleno = 2 (0x2), region = 107 }

// kernel: bert_decoder_forward.10
= control target key start
LH: loop header
LB: loop body
LE: loop exit
PB: predicated region body
PF: predicated region fallthrough
CT: control target
= control target key end

     0   :  { %s2117_s0 = inlined_call_operand.vmem [shape: f32[2,8,32], index: 0, kind: input, shape index: {}]   ;;  %s2118_s1 = inlined_call_operand.vmem [shape: f32[2,128,32], index: 1, kind: input, shape index: {}]   ;;  %s2119_s2 = inlined_call_operand.vmem [shape: f32[2,1,128], index: 2, kind: input, shape index: {}]   ;;  %s2120_s3 = inlined_call_operand.vmem [shape: f32[2,8,1], index: 3, kind: input, shape index: {}]   ;;  %s2121_s4 = inlined_call_operand.vmem [shape: bf16[32,32], index: 4, kind: input, shape index: {}]   ;;  %s2122_s5 = inlined_call_operand.vmem [shape: f32[1,32], index: 5, kind: input, shape index: {}]   ;;  %s2123_s6 = inlined_call_operand.vmem [shape: bf16[32,64], index: 6, kind: input, shape index: {}]   ;;  %s2124_s7 = inlined_call_operand.vmem [shape: f32[1,64], index: 7, kind: input, shape index: {}]   ;;  %s2125_s8 = inlined_call_operand.vmem [shape: bf16[32,32], index: 8, kind: input, shape index: {}]   ;;  %s2126_s9 = inlined_call_operand.vmem [shape: f32[1,32], index: 9, kind: input, shape index: {}]   ;;  %s2127_s10 = inlined_call_operand.vmem [shape: f32[1,32], index: 10, kind: input, shape index: {}]   ;;  %s2128_s11 = inlined_call_operand.vmem [shape: f32[1,32], index: 11, kind: input, shape index: {}]   ;;  %s2129_s12 = inlined_call_operand.vmem [shape: f32[2,8,32], index: 12, kind: output, shape index: {0}]   ;;  %s2130_s13 = inlined_call_operand.vmem [shape: bf16[2,2,8,128], index: 13, kind: output, shape index: {1}]  }
   0x1   :  { %2131 = sst [smem:[#allocation3_spill]] %s2123_s6 }
   0x2   :  { %s1803_s25 = smov 0   ;;  %s1805_s26 = smov 0  }
   0x3   :  { %s1807_s27 = smov 0   ;;  %s1809_s28 = smov 0  }
   0x4   :  { %s1811_s29 = smov 0  }
   0x5 LB: > { %s1414_s30 = sadd.s32 4294967295, %s1724_s29   ;;  %s36_s14 = sadd.s32 1, %s1720_s28  ;;  %s1724_s29 = sphi %s1811_s29, %s24_s29   ;;  %s1720_s28 = sphi %s1809_s28, %s2137_s28   ;;  %s1716_s27 = sphi %s1807_s27, %s2136_s27   ;;  %s1712_s26 = sphi %s1805_s26, %s2135_s26   ;;  %s1708_s25 = sphi %s1803_s25, %s2134_s25  }
   0x6   : > { %p38_p0 = scmp.ge.s32.totalorder %s36_s14, 2  ;;  %s349_s15 = sadd.s32 1, %s1712_s26 }
   0x7   : > { %p359_p1 = scmp.ne.s32.totalorder %s1712_s26, %s1708_s25  ;;  %p360_p2 = scmp.eq.s32.totalorder %s1414_s30, 1 }
   0x8   : > { %s2139_s14 = smov (%p38_p0, %s36_s14), 0  ;;  %p1418_p4 = scmp.ge.s32.totalorder %s1724_s29, 1 }
   0x9   : > { %p1835_p3 = por %p360_p2, %p359_p1  ;;  %s344_s17 = ssub.s32 %s1720_s28, %s2139_s14 }
   0xa   : > { %p442_p5 = scmp.lt.s32.totalorder %s1724_s29, 3  ;;  %p347_p6 = scmp.eq.s32.totalorder %s344_s17, 0 }
   0xc   : > { %p443_p7 = pnand %p1418_p4, %p442_p5 }
   0xd   : > { %s1844_s18 = scalar_select %p347_p6, %s1712_s26, %s349_s15  }
   0xe   : > { %446 = sbr.rel (%p443_p7) target bundleno = 2297 (0x8f9), region = 68  ;;  %s2133_s6 = sld [smem:[#allocation3_spill]] (!%p443_p7)  ;;  %v1726_v2 = vmov (!%p443_p7), 0.0   ;;  %v1672_v3 = vld [vmem:[%s2121_s4] sm:$0xff] (!%p443_p7)   ;;  %v1673_v4 = vld [vmem:[%s2121_s4 + $0x8] sm:$0xff] (!%p443_p7)   ;;  %vm1727_vm0 = vmmov (!%p443_p7), 0  }
   0xf   : > { %p509_p8 = scmp.lt.s32.totalorder (!%p443_p7), %s1716_s27, 1  ;;  %1506 = vmatprep.subr.bf16.mxu0 (!%p443_p7), %v1726_v2  ;;  %1510 = vmatprep.mubr.msk.bf16.mxu0 (!%p443_p7), %vm1727_vm0, %v1726_v2  ;;  %vm580_vm1 = vcmask (!%p443_p7), 261120   ;;  %v1429_v32 = vld [vmem:[%s2124_s7] ss:$0 sm:$0xff] (!%p443_p7)  ;;  %vm793_vm2 = vcmask (!%p443_p7), 130048   ;;  %s1731_s17 = smov (!%p443_p7), 80  }
  0x10   : > { %1507 = vmatpush3.bf16.msra.mxu0 (!%p443_p7), %v1672_v3  ;;  %s506_s19 = sand.u32 (!%p443_p7), 1, %s1708_s25  }
  0x11   : > { %1508 = vmatprep.subr.bf16.mxu0 (!%p443_p7), %v1726_v2 }
  0x14   : > { %v1670_v0 = vld [vmem:[%s2133_s6] sm:$0xff] (!%p443_p7)   ;;  %v1671_v1 = vld [vmem:[%s2133_s6 + $0x8] sm:$0xff] (!%p443_p7)   ;;  %1509 = vmatpush3.bf16.msra.mxu0 (!%p443_p7), %v1673_v4 }
  0x15   : > { %1514 = vmatprep.subr.bf16.mxu1 %v1670_v0  ;;  %s1854_s23 = scalar_select %p509_p8, %s1716_s27, 1  ;;  %1534 = vmatprep.subr.bf16.mxu0 %v1726_v2 }
  0x16   : > { %1515 = vmatpush3.bf16.msra.mxu1 %v1670_v0 }
  0x17   : > { %1516 = vmatprep.subr.bf16.mxu1 %v1671_v1  ;;  %s1453_s15 = sshll.u32 %s1854_s23, 7  ;;  %s1867_s20 = sshll.u32 %s1854_s23, 3 }
  0x18   : > { %s1872_s6 = scalar_lea.vmem %s2118_s1, %s1453_s15  ;;  %s515_s15 = scalar_lea.vmem %s2117_s0, %s1867_s20 }
  0x19   : > { %v540_v5 = vld [vmem:[%s1872_s6] sm:$0xff]  ;;  %v541_v6 = vld [vmem:[%s1872_s6 + $0x8] sm:$0xff]  ;;  %v542_v7 = vld [vmem:[%s1872_s6 + $0x10] sm:$0xff]  ;;  %s530_s25 = scalar_lea.vmem %s2120_s3, %s1867_s20 }
  0x1a   : > { %1517 = vmatpush3.bf16.msra.mxu1 %v1671_v1  ;;  %v629_v8 = vpack.c.bf16 %v541_v6, %v540_v5  ;;  %v543_v9 = vld [vmem:[%s1872_s6 + $0x18] sm:$0xff]  ;;  %v544_v10 = vld [vmem:[%s1872_s6 + $0x20] sm:$0xff]  ;;  %v545_v11 = vld [vmem:[%s1872_s6 + $0x28] sm:$0xff] }
  0x1b   : > { %v630_v12 = vpack.c.bf16 %v543_v9, %v542_v7  ;;  %v631_v13 = vpack.c.bf16 %v545_v11, %v544_v10  ;;  %1554 = vmatprep.subr.bf16.mxu1 %v1726_v2  ;;  %v546_v14 = vld [vmem:[%s1872_s6 + $0x30] sm:$0xff]  ;;  %v547_v15 = vld [vmem:[%s1872_s6 + $0x38] sm:$0xff]  ;;  %v1892_v16 = vld [vmem:[%s515_s15] sm:$0xff]  ;;  %s523_s15 = scalar_lea.vmem %s2119_s2, %s1854_s23  ;;  %s1730_s23 = smov 112  }
  0x1c   : > { %1518 = vmatprep.mubr.msk.bf16.mxu1 %vm580_vm1, %v629_v8  ;;  %v548_v17 = vld [vmem:[%s1872_s6 + $0x40] sm:$0xff]  ;;  %v549_v18 = vld [vmem:[%s1872_s6 + $0x48] sm:$0xff]  ;;  %v560_v19 = vpack.c.bf16 %v1892_v16, %v1892_v16  ;;  %v632_v20 = vpack.c.bf16 %v547_v15, %v546_v14  ;;  %v550_v22 = vld [vmem:[%s1872_s6 + $0x50] sm:$0xff] }
  0x1d   : > { %1519 = vmatmul.mubr.msk.bf16.vlgmr.msra.gmra.mrb[0].mxu1 %vm580_vm1, %v630_v12  ;;  %v633_v21 = vpack.c.bf16 %v549_v18, %v548_v17  ;;  %v551_v23 = vld [vmem:[%s1872_s6 + $0x58] sm:$0xff]  ;;  %v552_v24 = vld [vmem:[%s1872_s6 + $0x60] sm:$0xff]  ;;  %v553_v25 = vld [vmem:[%s1872_s6 + $0x68] sm:$0xff] }
  0x1e   : > { %1522 = vmatprep.mubr.msk.bf16.mxu1 %vm580_vm1, %v631_v13  ;;  %1511 = vmatmul.mubr.msk.bf16.vlgmr.msra.gmra.mrb[0].mxu0 %vm580_vm1, %v560_v19  ;;  %v634_v26 = vpack.c.bf16 %v551_v23, %v550_v22  ;;  %v635_v27 = vpack.c.bf16 %v553_v25, %v552_v24  ;;  %v554_v28 = vld [vmem:[%s1872_s6 + $0x70] sm:$0xff]  ;;  %v555_v29 = vld [vmem:[%s1872_s6 + $0x78] sm:$0xff]  ;;  %s1728_s6 = smov 96   ;;  %v1729_v25 = vmov 0  }
  0x1f   : > { %1550 = vmatprep.mubr.msk.bf16.mxu0 %vm1727_vm0, %v1726_v2  ;;  %v636_v30 = vpack.c.bf16 %v555_v29, %v554_v28  ;;  %1669 = vset.pattern.permute.xlu0 %v1729_v25 }
  0x25   : > { %1523 = vmatmul.mubr.msk.bf16.gmra.mrb[4].mxu1 %vm580_vm1, %v632_v20 }
  0x26   : > { %1526 = vmatprep.mubr.msk.bf16.mxu1 %vm580_vm1, %v633_v21  ;;  %v1425_v21 = vld [vmem:[%s2122_s5] ss:$0 sm:$0xff] }
  0x2d   : > { %1527 = vmatmul.mubr.msk.bf16.gmra.mrb[8].mxu1 %vm580_vm1, %v634_v26  ;;  %v788_v26 = vlaneseq }
  0x2e   : > { %1530 = vmatprep.mubr.msk.bf16.mxu1 %vm580_vm1, %v635_v27  ;;  %v785_v27 = vld [vmem:[%s523_s15] sm:$0x1]  ;;  %s1732_s15 = smov 16  }
  0x2f   : > { %v789_v28 = vshrl.u32 %v788_v26, 7  ;;  %vm786_vm3 = vcmp.gt.f32.partialorder %v785_v27, 0.5 }
  0x31   : > { %v790_v29 = vsub.s32 0, %v789_v28 }
  0x35   : > { %1531 = vmatmul.mubr.msk.bf16.gmra.mrb[12].mxu1 %vm580_vm1, %v636_v30  ;;  %v787_v30 = vsel %vm786_vm3, 1, %v1729_v25 }
  0x36   : > { %1570 = vmatprep.mubr.msk.bf16.mxu1 %vm1727_vm0, %v1726_v2 }
  0xf0   : > { %v1520_v31 = vpop.f32.mrb[0].mxu1 }
  0xf1   : > { %v714_v33 = vpop.f32.mrb[1].mxu1  ;;  %v723_v35 = vadd.f32 %v1520_v31, %v1429_v32  ;;  %v618_v40 = vpop.f32.mrb[0].mxu0  ;;  %v1969_v31 = vrot.slane %v787_v30, %v790_v29 }
  0xf2   : > { %v1521_v34 = vpop.f32.mrb[2].mxu1  ;;  %v715_v38 = vadd.f32 %v1429_v32, %v714_v33  ;;  %v1512_v42 = vpop.f32.mrb[1].mxu0  ;;  %v619_v22 = vadd.f32 %v1425_v21, %v618_v40 }
  0xf3   : > { %v726_v36 = vadd.f32 %v1521_v34, %v1429_v32  ;;  %v717_v37 = vpop.f32.mrb[3].mxu1  ;;  %v621_v44 = vpop.f32.mrb[2].mxu0  ;;  %vm792_vm4 = vcmp.eq.s32.totalorder %v1969_v31, 1 }
  0xf4   : > { %v718_v39 = vadd.f32 %v1429_v32, %v717_v37  ;;  %v1513_v45 = vpop.f32.mrb[3].mxu0  ;;  %v624_v24 = vpack.c.bf16 %v619_v22, %v619_v22 }
  0xf5   : > { %v1917_v41 = vpack.c.bf16 %v726_v36, %v723_v35 }
  0xf6   : > { %v1919_v43 = vpack.c.bf16 %v718_v39, %v715_v38 }
  0xf7   : > { %884 = vrot.lane.b32.xlu1 %v1917_v41, %s1728_s6  ;;  %v801_v57 = vsel %vm793_vm2, %v1917_v41, 0 }
  0xf8   : > { %v798_v46 = vsel %vm793_vm2, %v1919_v43, 0  ;;  %v1524_v47 = vpop.f32.mrb[4].mxu1 }
  0xf9   : > { %1535 = vmatpush3.bf16.xpose.msra.mxu0 %v798_v46  ;;  %v739_v48 = vadd.f32 %v1524_v47, %v1429_v32  ;;  %v730_v49 = vpop.f32.mrb[5].mxu1 }
  0xfa   : > { %v731_v50 = vadd.f32 %v1429_v32, %v730_v49  ;;  %v1525_v51 = vpop.f32.mrb[6].mxu1  ;;  %1536 = vmatprep.subr.bf16.mxu0 %v1726_v2 }
  0xfb   : > { %v742_v52 = vadd.f32 %v1525_v51, %v1429_v32  ;;  %v733_v53 = vpop.f32.mrb[7].mxu1 }
  0xfc   : > { %v734_v54 = vadd.f32 %v1429_v32, %v733_v53 }
  0xfd   : > { %v1926_v55 = vpack.c.bf16 %v742_v52, %v739_v48 }
  0xfe   : > { %v1928_v56 = vpack.c.bf16 %v734_v54, %v731_v50 }
  0xff   : > { %v807_v17 = vsel %vm793_vm2, %v1926_v55, 0 }
 0x100   : > { %v1528_v58 = vpop.f32.mrb[8].mxu1  ;;  %v804_v5 = vsel %vm793_vm2, %v1928_v56, 0 }
 0x101   : > { %1537 = vmatpush3.bf16.xpose.msra.mxu0 %v801_v57  ;;  %v755_v59 = vadd.f32 %v1528_v58, %v1429_v32  ;;  %v746_v60 = vpop.f32.mrb[9].mxu1 }
 0x102   : > { %1538 = vmatprep.subr.bf16.mxu0 %v1726_v2  ;;  %v747_v61 = vadd.f32 %v1429_v32, %v746_v60  ;;  %v1529_v62 = vpop.f32.mrb[10].mxu1 }
 0x103   : > { %v758_v63 = vadd.f32 %v1529_v62, %v1429_v32  ;;  %v749_v0 = vpop.f32.mrb[11].mxu1 }
 0x104   : > { %v750_v1 = vadd.f32 %v1429_v32, %v749_v0 }
 0x105   : > { %v1933_v3 = vpack.c.bf16 %v758_v63, %v755_v59 }
 0x106   : > { %v1935_v4 = vpack.c.bf16 %v750_v1, %v747_v61 }
 0x107   : > { %v813_v19 = vsel %vm793_vm2, %v1933_v3, 0 }
 0x108   : > { %v1532_v6 = vpop.f32.mrb[12].mxu1  ;;  %v810_v18 = vsel %vm793_vm2, %v1935_v4, 0 }
 0x109   : > { %1539 = vmatpush3.bf16.xpose.msra.mxu0 %v804_v5  ;;  %v771_v7 = vadd.f32 %v1532_v6, %v1429_v32  ;;  %v762_v8 = vpop.f32.mrb[13].mxu1 }
 0x10a   : > { %1540 = vmatprep.subr.bf16.mxu0 %v1726_v2  ;;  %v763_v9 = vadd.f32 %v1429_v32, %v762_v8  ;;  %v1533_v10 = vpop.f32.mrb[14].mxu1 }
 0x10b   : > { %v774_v11 = vadd.f32 %v1533_v10, %v1429_v32  ;;  %v765_v12 = vpop.f32.mrb[15].mxu1 }
 0x10c   : > { %v766_v13 = vadd.f32 %v1429_v32, %v765_v12 }
 0x10d   : > { %v1940_v14 = vpack.c.bf16 %v774_v11, %v771_v7 }
 0x10e   : > { %v1942_v15 = vpack.c.bf16 %v766_v13, %v763_v9 }
 0x10f   : > { %v819_v23 = vsel %vm793_vm2, %v1940_v14, 0 }
 0x110   : > { %v816_v20 = vsel %vm793_vm2, %v1942_v15, 0 }
 0x111   : > { %1541 = vmatpush3.bf16.xpose.msra.mxu0 %v807_v17 }
 0x112   : > { %1542 = vmatprep.subr.bf16.mxu0 %v1726_v2 }
 0x119   : > { %1543 = vmatpush3.bf16.xpose.msra.mxu0 %v810_v18 }
 0x11a   : > { %1544 = vmatprep.subr.bf16.mxu0 %v1726_v2 }
 0x121   : > { %1545 = vmatpush3.bf16.xpose.msra.mxu0 %v813_v19 }
 0x122   : > { %1546 = vmatprep.subr.bf16.mxu0 %v1726_v2 }
 0x129   : > { %1547 = vmatpush3.bf16.xpose.msra.mxu0 %v816_v20 }
 0x12a   : > { %1548 = vmatprep.subr.bf16.mxu0 %v1726_v2 }
 0x131   : > { %1549 = vmatpush3.bf16.xpose.msra.mxu0 %v819_v23 }
 0x132   : > { %1594 = vmatprep.subr.bf16.mxu0 %v1726_v2 }
 0x138   : > { %1551 = vmatmul.mubr.msk.bf16.vlgmr.msra.gmra.mrb[4].mxu0 %vm793_vm2, %v624_v24 }
 0x139   : > { %1610 = vmatprep.mubr.msk.bf16.mxu0 %vm1727_vm0, %v1726_v2 }
 0x169   : > { %v885_v44 = vpop.permute.xlu1 %884 }
 0x20b   : > { %v855_v32 = vpop.f32.mrb[4].mxu0 }
 0x20c   : > { %v861_v33 = vmul.f32 0.25, %v855_v32  ;;  %v1552_v34 = vpop.f32.mrb[5].mxu0 }
 0x20d   : > { %v858_v35 = vpop.f32.mrb[6].mxu0 }
 0x20e   : > { %v1553_v36 = vpop.f32.mrb[7].mxu0  ;;  %v862_v37 = vsel %vm792_vm4, -1e+09, %v861_v33 }
 0x20f   : > { %863 = vmax.xlane.f32.xlu0 %v862_v37  ;;  %v1674_v36 = vld [vmem:[%s2125_s8] sm:$0xff]  }
 0x225   : > { %882 = vrot.lane.b32.xlu0 %v1919_v43, %s1728_s6 }
 0x229   : > { %886 = vrot.lane.b32.xlu0 %v1928_v56, %s1728_s6 }
 0x22d   : > { %888 = vrot.lane.b32.xlu0 %v1926_v55, %s1728_s6 }
 0x231   : > { %890 = vrot.lane.b32.xlu0 %v1935_v4, %s1728_s6 }
 0x235   : > { %892 = vrot.lane.b32.xlu0 %v1933_v3, %s1728_s6 }
 0x239   : > { %896 = vrot.lane.b32.xlu0 %v1940_v14, %s1728_s6 }
 0x23d   : > { %949 = vrot.lane.b32.xlu0 %v1919_v43, %s1730_s23 }
 0x241   : > { %951 = vrot.lane.b32.xlu0 %v1917_v41, %s1730_s23 }
 0x245   : > { %953 = vrot.lane.b32.xlu0 %v1928_v56, %s1730_s23 }
 0x249   : > { %957 = vrot.lane.b32.xlu0 %v1935_v4, %s1730_s23 }
 0x24d   : > { %961 = vrot.lane.b32.xlu0 %v1942_v15, %s1730_s23 }
 0x251   : > { %947 = vrot.lane.b32.xlu0 %v624_v24, %s1730_s23 }
 0x255   : > { %1046 = vrot.lane.b32.xlu0 %v1919_v43, %s1731_s17 }
 0x259   : > { %1048 = vrot.lane.b32.xlu0 %v1917_v41, %s1731_s17 }
 0x25d   : > { %1056 = vrot.lane.b32.xlu0 %v1933_v3, %s1731_s17 }
 0x29c   : > { %v864_v38 = vpop.xlane.xlu0 %863 }
 0x29d   : > { %v865_v39 = vsub.f32 %v862_v37, %v864_v38 }
 0x29f   : > { %v866_v40 = vmul.f32 1.442695, %v865_v39 }
 0x2a0   : > { %v883_v42 = vpop.permute.xlu0 %882 }
 0x2a1   : > { %1676 = vpow2.f32 %v866_v40  ;;  %1555 = vmatpush3.bf16.msra.mxu1 %v883_v42 }
 0x2a2   : > { %1556 = vmatprep.subr.bf16.mxu1 %v1726_v2 }
 0x2a4   : > { %v887_v45 = vpop.permute.xlu0 %886 }
 0x2a5   : > { %1557 = vmatpush3.bf16.msra.mxu1 %v885_v44 }
 0x2a6   : > { %1558 = vmatprep.subr.bf16.mxu1 %v1726_v2 }
 0x2a8   : > { %v889_v43 = vpop.permute.xlu0 %888 }
 0x2a9   : > { %1559 = vmatpush3.bf16.msra.mxu1 %v887_v45 }
 0x2aa   : > { %1560 = vmatprep.subr.bf16.mxu1 %v1726_v2 }
 0x2ab   : > { %v1677_v41 = vpop.eup %1676 }
 0x2ac   : > { %868 = vadd.xlane.f32.xlu1 %v1677_v41  ;;  %v891_v46 = vpop.permute.xlu0 %890 }
 0x2ad   : > { %1561 = vmatpush3.bf16.msra.mxu1 %v889_v43  ;;  %v1443_v43 = vld [vmem:[%s2126_s9] ss:$0 sm:$0xff] }
 0x2ae   : > { %1562 = vmatprep.subr.bf16.mxu1 %v1726_v2 }
 0x2b0   : > { %v893_v47 = vpop.permute.xlu0 %892 }
 0x2b1   : > { %1563 = vmatpush3.bf16.msra.mxu1 %v891_v46 }
 0x2b2   : > { %1564 = vmatprep.subr.bf16.mxu1 %v1726_v2 }
 0x2b4   : > { %v897_v48 = vpop.permute.xlu0 %896 }
 0x2b5   : > { %1565 = vmatpush3.bf16.msra.mxu1 %v893_v47 }
 0x2b6   : > { %1566 = vmatprep.subr.bf16.mxu1 %v1726_v2 }
 0x2b8   : > { %v950_v49 = vpop.permute.xlu0 %949 }
 0x2b9   : > { %v969_v0 = vsel %vm793_vm2, %v950_v49, 0 }
 0x2bc   : > { %v952_v50 = vpop.permute.xlu0 %951 }
 0x2bd   : > { %894 = vrot.lane.b32.xlu1 %v1942_v15, %s1728_s6  ;;  %s1419_s6 = sshll.u32 %s506_s19, 3  ;;  %v972_v1 = vsel %vm793_vm2, %v952_v50, 0  ;;  %s537_s19 = scalar_lea.vmem %s2129_s12, %s1867_s20 }
 0x2be   : > { %s2022_s21 = scalar_lea.vmem [#allocation2], %s1419_s6  ;;  %s1450_s6 = sshll.u32 (%p1835_p3), %s1716_s27, 2 }
 0x2bf   : > { %s1240_s24 = scalar_lea.vmem (%p1835_p3), %s2130_s13, %s1450_s6 }
 0x2c0   : > { %v954_v51 = vpop.permute.xlu0 %953 }
 0x2c1   : > { %955 = vrot.lane.b32.xlu1 %v1926_v55, %s1730_s23 }
 0x2c4   : > { %v958_v52 = vpop.permute.xlu0 %957 }
 0x2c5   : > { %959 = vrot.lane.b32.xlu1 %v1933_v3, %s1730_s23  ;;  %v975_v3 = vsel %vm793_vm2, %v954_v51, 0  ;;  %v981_v7 = vsel %vm793_vm2, %v958_v52, 0  ;;  %v1213_v51 = vld [vmem:[%s530_s25] sm:$0xff] }
 0x2c8   : > { %v962_v53 = vpop.permute.xlu0 %961 }
 0x2c9   : > { %963 = vrot.lane.b32.xlu1 %v1940_v14, %s1730_s23  ;;  %v987_v10 = vsel %vm793_vm2, %v962_v53, 0 }
 0x2cc   : > { %v948_v54 = vpop.permute.xlu0 %947 }
 0x2d0   : > { %v1047_v57 = vpop.permute.xlu0 %1046 }
 0x2d1   : > { %1595 = vmatpush3.bf16.msra.mxu0 %v1047_v57 }
 0x2d2   : > { %1596 = vmatprep.subr.bf16.mxu0 %v1726_v2 }
 0x2d4   : > { %v1049_v58 = vpop.permute.xlu0 %1048 }
 0x2d5   : > { %1597 = vmatpush3.bf16.msra.mxu0 %v1049_v58 }
 0x2d6   : > { %1598 = vmatprep.subr.bf16.mxu0 %v1726_v2 }
 0x339   : > { %v869_v59 = vpop.xlane.xlu1 %868 }
 0x33a   : > { %1678 = vrcp.f32 %v869_v59 }
 0x33d   : > { %v895_v60 = vpop.permute.xlu1 %894 }
 0x33e   : > { %1567 = vmatpush3.bf16.msra.mxu1 %v895_v60 }
 0x33f   : > { %1568 = vmatprep.subr.bf16.mxu1 %v1726_v2 }
 0x341   : > { %v956_v5 = vpop.permute.xlu1 %955 }
 0x342   : > { %1569 = vmatpush3.bf16.msra.mxu1 %v897_v48  ;;  %v978_v6 = vsel %vm793_vm2, %v956_v5, 0 }
 0x343   : > { %1574 = vmatprep.subr.bf16.mxu1 %v1726_v2 }
 0x344   : > { %v1679_v61 = vpop.eup %1678 }
 0x345   : > { %v871_v62 = vmul.f32 %v1679_v61, %v1677_v41  ;;  %v960_v8 = vpop.permute.xlu1 %959 }
 0x346   : > { %v984_v9 = vsel %vm793_vm2, %v960_v8, 0 }
 0x347   : > { %v872_v63 = vpack.c.bf16 %v871_v62, %v871_v62  ;;  %v1447_v62 = vld [vmem:[%s2127_s10] ss:$0 sm:$0xff] }
 0x349   : > { %1571 = vmatmul.mubr.bf16.vlgmr.msra.gmra.mrb[16].mxu1 %v872_v63  ;;  %873 = vst [vmem:[%s2022_s21] sm:$0xf] %v872_v63  ;;  %v964_v11 = vpop.permute.xlu1 %963 }
 0x34a   : > { %1590 = vmatprep.mubr.msk.bf16.mxu1 %vm1727_vm0, %v1726_v2  ;;  %v990_v12 = vsel %vm793_vm2, %v964_v11, 0 }
 0x34b   : > { %1575 = vmatpush3.bf16.xpose.msra.mxu1 %v969_v0  ;;  %v1448_v0 = vld [vmem:[%s2128_s11] ss:$0 sm:$0xff] }
 0x34c   : > { %1576 = vmatprep.subr.bf16.mxu1 %v1726_v2 }
 0x353   : > { %1577 = vmatpush3.bf16.xpose.msra.mxu1 %v972_v1 }
 0x354   : > { %1578 = vmatprep.subr.bf16.mxu1 %v1726_v2 }
 0x35b   : > { %1579 = vmatpush3.bf16.xpose.msra.mxu1 %v975_v3 }
 0x35c   : > { %1580 = vmatprep.subr.bf16.mxu1 %v1726_v2 }
 0x363   : > { %1581 = vmatpush3.bf16.xpose.msra.mxu1 %v978_v6 }
 0x364   : > { %1582 = vmatprep.subr.bf16.mxu1 %v1726_v2 }
 0x36b   : > { %1583 = vmatpush3.bf16.xpose.msra.mxu1 %v981_v7  ;;  %v1256_v7 = vld [vmem:[%s2022_s21] sm:$0xf] (%p1835_p3) }
 0x36c   : > { %1584 = vmatprep.subr.bf16.mxu1 %v1726_v2  ;;  %1257 = vst [vmem:[%s1240_s24] sm:$0xf] (%p1835_p3), %v1256_v7 }
 0x373   : > { %1585 = vmatpush3.bf16.xpose.msra.mxu1 %v984_v9 }
 0x374   : > { %1586 = vmatprep.subr.bf16.mxu1 %v1726_v2 }
 0x37b   : > { %1587 = vmatpush3.bf16.xpose.msra.mxu1 %v987_v10 }
 0x37c   : > { %1588 = vmatprep.subr.bf16.mxu1 %v1726_v2 }
 0x383   : > { %1589 = vmatpush3.bf16.xpose.msra.mxu1 %v990_v12 }
 0x38a   : > { %1591 = vmatmul.mubr.msk.bf16.vlgmr.msra.gmra.mrb[20].mxu1 %vm793_vm2, %v948_v54 }
 0x41c   : > { %v940_v13 = vpop.f32.mrb[16].mxu1 }
 0x41d   : > { %v1572_v17 = vpop.f32.mrb[17].mxu1 }
 0x41e   : > { %v943_v18 = vpop.f32.mrb[18].mxu1 }
 0x41f   : > { %v1573_v19 = vpop.f32.mrb[19].mxu1 }
 0x45d   : > { %v1026_v20 = vpop.f32.mrb[20].mxu1 }
 0x45e   : > { %v1032_v21 = vmul.f32 0.25, %v1026_v20  ;;  %v1592_v22 = vpop.f32.mrb[21].mxu1 }
 0x45f   : > { %v1029_v23 = vpop.f32.mrb[22].mxu1 }
 0x460   : > { %v1593_v24 = vpop.f32.mrb[23].mxu1  ;;  %v1033_v25 = vsel %vm792_vm4, -1e+09, %v1032_v21 }
 0x461   : > { %1034 = vmax.xlane.f32.xlu1 %v1033_v25 }
 0x472   : > { %1050 = vrot.lane.b32.xlu1 %v1928_v56, %s1731_s17 }
 0x476   : > { %1052 = vrot.lane.b32.xlu1 %v1926_v55, %s1731_s17 }
 0x47a   : > { %1054 = vrot.lane.b32.xlu1 %v1935_v4, %s1731_s17  ;;  %v1057_v4 = vpop.permute.xlu0 %1056 }
 0x47e   : > { %1058 = vrot.lane.b32.xlu1 %v1942_v15, %s1731_s17 }
 0x4ee   : > { %v1035_v26 = vpop.xlane.xlu1 %1034 }
 0x4ef   : > { %v1036_v27 = vsub.f32 %v1033_v25, %v1035_v26 }
 0x4f1   : > { %v1037_v28 = vmul.f32 1.442695, %v1036_v27 }
 0x4f2   : > { %v1051_v29 = vpop.permute.xlu1 %1050 }
 0x4f3   : > { %1680 = vpow2.f32 %v1037_v28  ;;  %1599 = vmatpush3.bf16.msra.mxu0 %v1051_v29 }
 0x4f4   : > { %1600 = vmatprep.subr.bf16.mxu0 %v1726_v2 }
 0x4f6   : > { %v1053_v30 = vpop.permute.xlu1 %1052 }
 0x4f7   : > { %1601 = vmatpush3.bf16.msra.mxu0 %v1053_v30 }
 0x4f8   : > { %1602 = vmatprep.subr.bf16.mxu0 %v1726_v2 }
 0x4fa   : > { %v1055_v56 = vpop.permute.xlu1 %1054 }
 0x4fb   : > { %1603 = vmatpush3.bf16.msra.mxu0 %v1055_v56 }
 0x4fc   : > { %1604 = vmatprep.subr.bf16.mxu0 %v1726_v2 }
 0x4fd   : > { %v1681_v55 = vpop.eup %1680 }
 0x4fe   : > { %1039 = vadd.xlane.f32.xlu0 %v1681_v55  ;;  %v1059_v15 = vpop.permute.xlu1 %1058 }
 0x4ff   : > { %1605 = vmatpush3.bf16.msra.mxu0 %v1057_v4 }
 0x500   : > { %1606 = vmatprep.subr.bf16.mxu0 %v1726_v2 }
 0x503   : > { %1607 = vmatpush3.bf16.msra.mxu0 %v1059_v15 }
 0x504   : > { %1608 = vmatprep.subr.bf16.mxu0 %v1726_v2 }
 0x514   : > { %1060 = vrot.lane.b32.xlu0 %v1940_v14, %s1731_s17  ;;  %v1675_v14 = vld [vmem:[%s2125_s8 + $0x8] sm:$0xff]  }
 0x58b   : > { %v1040_v31 = vpop.xlane.xlu0 %1039 }
 0x58c   : > { %1682 = vrcp.f32 %v1040_v31 }
 0x58f   : > { %v1061_v32 = vpop.permute.xlu0 %1060 }
 0x590   : > { %1609 = vmatpush3.bf16.msra.mxu0 %v1061_v32 }
 0x591   : > { %1614 = vmatprep.subr.bf16.mxu0 %v1726_v2 }
 0x596   : > { %v1683_v33 = vpop.eup %1682 }
 0x597   : > { %v1042_v34 = vmul.f32 %v1683_v33, %v1681_v55 }
 0x599   : > { %v1043_v35 = vpack.c.bf16 %v1042_v34, %v1042_v34 }
 0x59b   : > { %1442 = vst [vmem:[%s2022_s21 + $0x4] sm:$0xf] %v1043_v35  ;;  %1611 = vmatmul.mubr.bf16.vlgmr.msra.gmra.mrb[8].mxu0 %v1043_v35 }
 0x59c   : > { %1618 = vmatprep.mubr.msk.bf16.mxu0 %vm1727_vm0, %v1726_v2  ;;  %1615 = vmatpush3.bf16.msra.mxu0 %v1674_v36 }
 0x59d   : > { %1616 = vmatprep.subr.bf16.mxu0 %v1726_v2 }
 0x5a0   : > { %1617 = vmatpush3.bf16.msra.mxu0 %v1675_v14 }
 0x5a2   : > { %v1258_v8 = vld [vmem:[%s2022_s21 + $0x4] sm:$0xf] (%p1835_p3) }
 0x5a3   : > { %1259 = vst [vmem:[%s1240_s24 + $0x8] sm:$0xf] (%p1835_p3), %v1258_v8 }
 0x66e   : > { %v1104_v37 = vpop.f32.mrb[8].mxu0 }
 0x66f   : > { %1111 = vrot.lane.b32.xlu1 %v1104_v37, %s1732_s15  ;;  %v1612_v38 = vpop.f32.mrb[9].mxu0 }
 0x670   : > { %v1107_v39 = vpop.f32.mrb[10].mxu0 }
 0x671   : > { %v1613_v40 = vpop.f32.mrb[11].mxu0 }
 0x6e1   : > { %v1112_v42 = vpop.permute.xlu1 %1111 }
 0x6e2   : > { %v1114_v44 = vsel %vm793_vm2, %v940_v13, %v1112_v42 }
 0x6e3   : > { %v1119_v45 = vpack.c.bf16 %v1114_v44, %v1114_v44 }
 0x6e5   : > { %1619 = vmatmul.mubr.msk.bf16.vlgmr.msra.gmra.mrb[12].mxu0 %vm580_vm1, %v1119_v45 }
 0x7b8   : > { %v1176_v41 = vpop.f32.mrb[12].mxu0 }
 0x7b9   : > { %v1177_v2 = vadd.f32 %v1443_v43, %v1176_v41  ;;  %v1620_v46 = vpop.f32.mrb[13].mxu0 }
 0x7ba   : > { %v1179_v47 = vpop.f32.mrb[14].mxu0 }
 0x7bb   : > { %v1621_v48 = vpop.f32.mrb[15].mxu0  ;;  %v1182_v49 = vadd.f32 %v1177_v2, %v1892_v16 }
 0x7bd   : > { %v1185_v50 = vsel %vm580_vm1, %v1182_v49, 0.0 }
 0x7be   : > { %1186 = vadd.xlane.f32.xlu0 %v1185_v50 }
 0x7d4   : > { %1216 = vperm.xlu0 %1669, %v1213_v51  }
 0x84b   : > { %v1187_v52 = vpop.xlane.xlu0 %1186 }
 0x84c   : > { %v1189_v53 = vmul.f32 0.03125, %v1187_v52 }
 0x84e   : > { %v1190_v54 = vsub.f32 %v1182_v49, %v1189_v53 }
 0x850   : > { %v1191_v57 = vmul.f32 %v1190_v54, %v1190_v54 }
 0x852   : > { %v1192_v58 = vsel %vm580_vm1, %v1191_v57, 0.0 }
 0x853   : > { %1193 = vadd.xlane.f32.xlu1 %v1192_v58  ;;  %v1217_v3 = vpop.permute.xlu0 %1216 }
 0x8e0   : > { %v1194_v59 = vpop.xlane.xlu1 %1193 }
 0x8e1   : > { %v1195_v60 = vmul.f32 0.03125, %v1194_v59 }
 0x8e3   : > { %v1196_v16 = vadd.f32 1e-05, %v1195_v60 }
 0x8e5   : > { %1684 = vrsqrt.f32 %v1196_v16 }
 0x8ef   : > { %v1685_v61 = vpop.eup %1684 }
 0x8f0   : > { %v1198_v63 = vmul.f32 %v1685_v61, %v1190_v54 }
 0x8f2   : > { %v1205_v1 = vmul.f32 %v1447_v62, %v1198_v63  ;;  %1237 = sbr.rel (!%p1835_p3) target bundleno = 2297 (0x8f9), region = 76 }
 0x8f4   : > { %v1212_v5 = vadd.f32 %v1448_v0, %v1205_v1 }
 0x8f6   : > { %v1219_v6 = vmul.f32 %v1217_v3, %v1212_v5 }
 0x8f8   : > { %1220 = vst.msk [vmem:[%s537_s19] sm:$0xff] %vm580_vm1, %v1219_v6 }
 0x8f9 PF: > { %s24_s29 = sadd.s32 1, %s1724_s29   ;;  %s2134_s25 = smov %s1712_s26 }
 0x8fa   : > { %p21_p9 = scmp.ge.s32.totalorder %s24_s29, 4   ;;  %s2135_s26 = smov %s1844_s18 }
 0x8fb   : > { %s2136_s27 = smov %s1720_s28  ;;  %s2137_s28 = smov %s2139_s14 }
 0x8fc   :  { %23 = sbr.rel (!%p21_p9) target bundleno = 5 (0x5), region = 161 }

// kernel: bert_decoder_forward.15
= control target key start
LH: loop header
LB: loop body
LE: loop exit
PB: predicated region body
PF: predicated region fallthrough
CT: control target
= control target key end

     0   :  { %v130_v0 = vmov 0.0   ;;  %vm131_vm0 = vmmov 0   ;;  %vm42_vm1 = vcmask 261120   ;;  %s173_s1 = inlined_call_operand.vmem [shape: bf16[32,128], index: 1, kind: input, shape index: {}]   ;;  %s174_s0 = inlined_call_operand.vmem [shape: f32[16,32], index: 0, kind: input, shape index: {}]   ;;  %s175_s2 = inlined_call_operand.vmem [shape: f32[1,128], index: 2, kind: input, shape index: {}]   ;;  %s176_s3 = inlined_call_operand.vmem [shape: f32[16,128], index: 3, kind: output, shape index: {}]  }
   0x1   :  { %118 = vmatprep.subr.bf16.mxu0 %v130_v0  ;;  %v128_v1 = vld [vmem:[%s173_s1] sm:$0xff]   ;;  %122 = vmatprep.mubr.msk.bf16.mxu0 %vm131_vm0, %v130_v0  ;;  %v129_v2 = vld [vmem:[%s173_s1 + $0x8] sm:$0xff]  }
   0x2   :  { %119 = vmatpush3.bf16.msra.mxu0 %v128_v1  ;;  %v23_v3 = vld [vmem:[%s174_s0] sm:$0xff]  ;;  %v24_v4 = vld [vmem:[%s174_s0 + $0x8] sm:$0xff] }
   0x3   :  { %120 = vmatprep.subr.bf16.mxu0 %v130_v0  ;;  %v29_v5 = vpack.c.bf16 %v24_v4, %v23_v3  ;;  %v114_v6 = vld [vmem:[%s175_s2] ss:$0 sm:$0xff] }
   0x6   :  { %121 = vmatpush3.bf16.msra.mxu0 %v129_v2 }
   0x9   :  { %123 = vmatmul.mubr.msk.bf16.vlgmr.msra.gmra.mrb[0].mxu0 %vm42_vm1, %v29_v5 }
  0xdc   :  { %v80_v7 = vpop.f32.mrb[0].mxu0 }
  0xdd   :  { %v103_v8 = vadd.f32 %v114_v6, %v80_v7  ;;  %v124_v9 = vpop.f32.mrb[1].mxu0 }
  0xde   :  { %v83_v10 = vpop.f32.mrb[2].mxu0 }
  0xdf   :  { %105 = vst [vmem:[%s176_s3] sm:$0xff] %v103_v8  ;;  %v104_v11 = vadd.f32 %v114_v6, %v83_v10  ;;  %v125_v12 = vpop.f32.mrb[3].mxu0 }
  0xe1   :  { %106 = vst [vmem:[%s176_s3 + $0x8] sm:$0xff] %v104_v11 }

</bundles_post_ra>
